<compile_context>
chip_gen: v6e
topology: v6e:2x2x1
jax: 0.10.0
libtpu: 0.0.40
codegen_flags: <defaults>
</compile_context>

<pallas_src>
import functools

import numpy as np

import jax
import jax.numpy as jnp
from jax.experimental import pallas as pl
from jax.experimental.pallas import tpu as pltpu

TAPS = 9  # 3x3 kernel


# ---------------------------------------------------------------------------
# Constant one-hot im2col selection matrix (built once on the host).
# G[t, p, q] = 1 iff output position p reads input position q for tap t
# (3x3 kernel, stride 2, pad 1); padded taps are all-zero rows.  Returned
# stacked as (9*P_out, P_in) so the kernel can gather all taps in ONE matmul.
# ---------------------------------------------------------------------------
def make_im2col_gather(h, w, ho, wo):
    g = np.zeros((TAPS, ho * wo, h * w), np.float32)
    for di in range(3):
        for dj in range(3):
            t = di * 3 + dj
            for oh in range(ho):
                ih = 2 * oh + di - 1
                if ih < 0 or ih >= h:
                    continue
                for ow in range(wo):
                    iw = 2 * ow + dj - 1
                    if iw < 0 or iw >= w:
                        continue
                    g[t, oh * wo + ow, ih * w + iw] = 1.0
    return jnp.asarray(g.reshape(TAPS * ho * wo, h * w))


# ---------------------------------------------------------------------------
# Fused Pallas kernel: per batch element, run the whole encoder in VMEM.
#   refs = (x, [g_l, w_l, b_l] * L, w_lin, b_lin, out)
#   x      : (1, H*W, Cin)            bf16   (NHWC, spatial flattened)
#   g_l    : (9*P_out, P_in)          bf16   stacked one-hot tap selection
#   w_l    : (9, Cin_l, Cout_l)       bf16   per-tap conv weights
#   b_l    : (1, Cout_l)              f32
#   w_lin  : (lin_out, lin_in)        bf16   (torch (out,in) layout)
#   b_lin  : (lin_out, 1)             f32
#   out    : (1, lin_out, C_last)     f32    lane-dense (C_last = 128)
# ---------------------------------------------------------------------------
def _fused_encoder_kernel(*refs, num_layers):
    x_ref = refs[0]
    conv_refs = refs[1:1 + 3 * num_layers]
    wlin_ref = refs[1 + 3 * num_layers]
    blin_ref = refs[2 + 3 * num_layers]
    o_ref = refs[-1]

    act = x_ref[0]                                       # (P_in, Cin) bf16

    # --- Cnn: stride-2 conv + ReLU stack -----------------------------------
    for l in range(num_layers):
        g_ref, w_ref, b_ref = conv_refs[3 * l:3 * l + 3]
        p_out = g_ref.shape[0] // TAPS
        cout = w_ref.shape[2]

        # One MXU gather for all 9 taps: (9*P_out, P_in) @ (P_in, Cin).
        # One-hot rows copying bf16 values -> exact; cast back to bf16 is free
        # of error and keeps the next matmuls on the bf16 MXU path.
        sel_all = jnp.dot(g_ref[...], act,
                          preferred_element_type=jnp.float32
                          ).astype(jnp.bfloat16)          # (9*P_out, Cin)

        acc = jnp.zeros((p_out, cout), jnp.float32)
        for t in range(TAPS):                             # static unroll
            # 8-sublane-aligned static row slice (P_out is a multiple of 8..16)
            sel_t = sel_all[t * p_out:(t + 1) * p_out]
            acc = acc + jnp.dot(sel_t, w_ref[t],
                                preferred_element_type=jnp.float32)

        # f32 epilogue (bias + ReLU), re-quantize to bf16 for the next matmul.
        act = jnp.maximum(acc + b_ref[...], 0.0).astype(jnp.bfloat16)

    # --- Flattern + Linear (transposed product -> lane-dense store) --------
    # act is (P_last, C_last): rows = spatial index, cols = channels, so
    # out_T[j, c] = sum_k W_lin[j, k] * act[k, c] + b_lin[j]  ==  out[n, c, j].
    out_t = jnp.dot(wlin_ref[...], act,
                    preferred_element_type=jnp.float32) + blin_ref[...]
    o_ref[0] = out_t.astype(o_ref.dtype)


# ---------------------------------------------------------------------------
# Parameters
# ---------------------------------------------------------------------------
def init_blur_encoder(key, s_image=16, cnn_layer=2, s_ch=64, i_ch=3):
    o_size = s_image // (2 ** (cnn_layer - 1))
    lin_in = (s_image // (2 ** cnn_layer)) ** 2
    lin_out = o_size ** 2

    chans = [i_ch] + [s_ch * (2 ** l) for l in range(cnn_layer)]
    spatial = [s_image // (2 ** l) for l in range(cnn_layer + 1)]

    convs = []
    for l in range(cnn_layer):
        key, kw, kb = jax.random.split(key, 3)
        cin, cout = chans[l], chans[l + 1]
        # per-tap weights (9, Cin, Cout)  <=>  torch (Cout,Cin,3,3) reindexed
        w = (0.05 * jax.random.normal(kw, (TAPS, cin, cout), jnp.float32)
             ).astype(jnp.bfloat16)
        b = 0.01 * jax.random.normal(kb, (1, cout), jnp.float32)
        g = make_im2col_gather(spatial[l], spatial[l],
                               spatial[l + 1], spatial[l + 1]
                               ).astype(jnp.bfloat16)     # (9*P_out, P_in)
        convs.append((g, w, b))

    key, kw, kb = jax.random.split(key, 3)
    # torch Linear layout (out_features, in_features) -- used directly.
    w_lin = (0.05 * jax.random.normal(kw, (lin_out, lin_in), jnp.float32)
             ).astype(jnp.bfloat16)
    b_lin = 0.01 * jax.random.normal(kb, (lin_out, 1), jnp.float32)

    params = {"convs": convs, "linear": (w_lin, b_lin)}
    meta = {"s_image": s_image, "o_size": o_size, "o_channel": chans[-1],
            "lin_in": lin_in, "lin_out": lin_out, "i_ch": i_ch}
    return params, meta


# ---------------------------------------------------------------------------
# Forward: one fused pallas_call over a batch-parallel grid.
# ---------------------------------------------------------------------------
def blur_encoder_forward(x_nchw, params, meta):
    n = x_nchw.shape[0]
    s = meta["s_image"]
    i_ch = meta["i_ch"]
    c_last = meta["o_channel"]
    lin_out = meta["lin_out"]
    o = meta["o_size"]
    num_layers = len(params["convs"])

    # NCHW -> (N, H*W, C), bf16: channels on lanes, spatial on sublanes.
    x = jnp.transpose(x_nchw, (0, 2, 3, 1)).reshape(n, s * s, i_ch)
    x = x.astype(jnp.bfloat16)

    inputs = [x]
    in_specs = [pl.BlockSpec((1, s * s, i_ch), lambda b: (b, 0, 0))]
    for (g, w, bb) in params["convs"]:
        inputs += [g, w, bb]
        in_specs += [pl.BlockSpec(g.shape, lambda b: (0, 0)),
                     pl.BlockSpec(w.shape, lambda b: (0, 0, 0)),
                     pl.BlockSpec(bb.shape, lambda b: (0, 0))]
    w_lin, b_lin = params["linear"]
    inputs += [w_lin, b_lin]
    in_specs += [pl.BlockSpec(w_lin.shape, lambda b: (0, 0)),
                 pl.BlockSpec(b_lin.shape, lambda b: (0, 0))]

    out = pl.pallas_call(
        functools.partial(_fused_encoder_kernel, num_layers=num_layers),
        out_shape=jax.ShapeDtypeStruct((n, lin_out, c_last), jnp.float32),
        grid=(n,),
        in_specs=in_specs,
        out_specs=pl.BlockSpec((1, lin_out, c_last), lambda b: (b, 0, 0)),
        compiler_params=pltpu.CompilerParams(
            dimension_semantics=("parallel",)),
    )(*inputs)

    # (N, oSize^2, C) -> NCHW (N, C, oSize, oSize).  Tiny (64 KB) epilogue.
    return jnp.transpose(out, (0, 2, 1)).reshape(n, c_last, o, o)


# ---------------------------------------------------------------------------
# Pure-JAX reference (independent XLA im2col path) for correctness checking.
# Mirrors the kernel's bf16 quantization points so only f32 accumulation-order
# differences remain.
# ---------------------------------------------------------------------------
def _reference_forward(x_nchw, params, meta):
    x = jnp.transpose(x_nchw, (0, 2, 3, 1)).astype(jnp.bfloat16)
    for (_, w, b) in params["convs"]:
        n, h, ww, c = x.shape
        xp = jnp.pad(x.astype(jnp.float32), ((0, 0), (1, 1), (1, 1), (0, 0)))
        ho, wo = h // 2, ww // 2
        cols = []
        for di in range(3):
            for dj in range(3):
                cols.append(xp[:, di:di + 2 * ho:2, dj:dj + 2 * wo:2, :])
        patches = jnp.stack(cols, axis=3).reshape(n * ho * wo, 9 * c)
        wf = w.astype(jnp.float32).reshape(9 * c, -1)
        y = patches @ wf + b.astype(jnp.float32).reshape(1, -1)
        x = jnp.maximum(y, 0.0).reshape(n, ho, wo, -1).astype(jnp.bfloat16)
    n, h, ww, c = x.shape
    feats = jnp.transpose(x, (0, 3, 1, 2)).reshape(n, c, h * ww).astype(jnp.float32)
    w_lin, b_lin = params["linear"]
    out = jnp.einsum("nck,jk->ncj", feats, w_lin.astype(jnp.float32))
    out = out + b_lin.astype(jnp.float32).reshape(1, 1, -1)
    o = meta["o_size"]
    return out.reshape(n, c, o, o)


if __name__ == "__main__":
    # Small, forward-consistent shapes: sImage=16, cnnLayer=2, batch=2, 3 input ch.
    S_IMAGE, CNN_LAYER, BATCH, I_CH = 16, 2, 2, 3

    key = jax.random.PRNGKey(0)
    key, kp, kx = jax.random.split(key, 3)
    params, meta = init_blur_encoder(kp, s_image=S_IMAGE, cnn_layer=CNN_LAYER,
                                     i_ch=I_CH)

    x = jax.random.normal(kx, (BATCH, I_CH, S_IMAGE, S_IMAGE), jnp.float32)

    fwd = jax.jit(lambda inp: blur_encoder_forward(inp, params, meta))
    y = fwd(x)
    jax.block_until_ready(y)

    expected = (BATCH, meta["o_channel"], meta["o_size"], meta["o_size"])  # (2,128,8,8)
    assert y.shape == expected, (y.shape, expected)
    assert y.dtype == jnp.float32

    y_ref = _reference_forward(x, params, meta)
    assert bool(jnp.all(jnp.isfinite(y)))
    assert bool(jnp.allclose(y, y_ref, rtol=1e-2, atol=1e-3)), (
        float(jnp.max(jnp.abs(y - y_ref))))

    print("KERNEL_OK")
</pallas_src>

<mosaic_0001>
module attributes {stable_mosaic.version = 11 : i64} {
  func.func @_fused_encoder_kernel(%arg0: i32, %arg1: memref<1x256x3xbf16, #tpu.memory_space<vmem>>, %arg2: memref<576x256xbf16, #tpu.memory_space<vmem>>, %arg3: memref<9x3x64xbf16, #tpu.memory_space<vmem>>, %arg4: memref<1x64xf32, #tpu.memory_space<vmem>>, %arg5: memref<144x64xbf16, #tpu.memory_space<vmem>>, %arg6: memref<9x64x128xbf16, #tpu.memory_space<vmem>>, %arg7: memref<1x128xf32, #tpu.memory_space<vmem>>, %arg8: memref<64x16xbf16, #tpu.memory_space<vmem>>, %arg9: memref<64x1xf32, #tpu.memory_space<vmem>>, %arg10: memref<1x64x128xf32, #tpu.memory_space<vmem>>) attributes {dimension_semantics = [#tpu.dimension_semantics<parallel>], iteration_bounds = array<i64: 2>, scalar_prefetch = 0 : i64, scratch_operands = 0 : i64, tpu.core_type = #tpu.core_type<tc>, window_params = [{transform_indices = @transform_0, window_bounds = array<i64: 1, 256, 3>}, {pipeline_mode = #tpu.pipeline_mode<synchronous>, transform_indices = @transform_1, window_bounds = array<i64: 576, 256>}, {pipeline_mode = #tpu.pipeline_mode<synchronous>, transform_indices = @transform_2, window_bounds = array<i64: 9, 3, 64>}, {pipeline_mode = #tpu.pipeline_mode<synchronous>, transform_indices = @transform_3, window_bounds = array<i64: 1, 64>}, {pipeline_mode = #tpu.pipeline_mode<synchronous>, transform_indices = @transform_4, window_bounds = array<i64: 144, 64>}, {pipeline_mode = #tpu.pipeline_mode<synchronous>, transform_indices = @transform_5, window_bounds = array<i64: 9, 64, 128>}, {pipeline_mode = #tpu.pipeline_mode<synchronous>, transform_indices = @transform_6, window_bounds = array<i64: 1, 128>}, {pipeline_mode = #tpu.pipeline_mode<synchronous>, transform_indices = @transform_7, window_bounds = array<i64: 64, 16>}, {pipeline_mode = #tpu.pipeline_mode<synchronous>, transform_indices = @transform_8, window_bounds = array<i64: 64, 1>}, {transform_indices = @transform_9, window_bounds = array<i64: 1, 64, 128>}]} {
    %c0 = arith.constant 0 : index
    %c0_0 = arith.constant 0 : index
    %c0_1 = arith.constant 0 : index
    %0 = vector.load %arg1[%c0, %c0_0, %c0_1] : memref<1x256x3xbf16, #tpu.memory_space<vmem>>, vector<1x256x3xbf16>
    %1 = vector.shape_cast %0 : vector<1x256x3xbf16> to vector<256x3xbf16>
    %c0_2 = arith.constant 0 : index
    %c0_3 = arith.constant 0 : index
    %2 = vector.load %arg2[%c0_2, %c0_3] : memref<576x256xbf16, #tpu.memory_space<vmem>>, vector<576x256xbf16>
    %cst = arith.constant dense<0.000000e+00> : vector<576x3xf32>
    %3 = tpu.matmul %2, %1, %cst {dimension_numbers = #tpu.dot_dimension_numbers<[1], [0], [0], [1], [0, 0, 1, 1], [], []>} : vector<576x256xbf16>, vector<256x3xbf16>, vector<576x3xf32> -> vector<576x3xf32>
    %4 = arith.truncf %3 : vector<576x3xf32> to vector<576x3xbf16>
    %cst_4 = arith.constant 0.000000e+00 : f32
    %5 = vector.broadcast %cst_4 : f32 to vector<64x64xf32>
    %6 = vector.extract_strided_slice %4 {offsets = [0, 0], sizes = [64, 3], strides = [1, 1]} : vector<576x3xbf16> to vector<64x3xbf16>
    %c0_5 = arith.constant 0 : index
    %c0_6 = arith.constant 0 : index
    %c0_7 = arith.constant 0 : index
    %7 = vector.load %arg3[%c0_5, %c0_6, %c0_7] : memref<9x3x64xbf16, #tpu.memory_space<vmem>>, vector<1x3x64xbf16>
    %8 = vector.shape_cast %7 : vector<1x3x64xbf16> to vector<3x64xbf16>
    %cst_8 = arith.constant dense<0.000000e+00> : vector<64x64xf32>
    %9 = tpu.matmul %6, %8, %cst_8 {dimension_numbers = #tpu.dot_dimension_numbers<[1], [0], [0], [1], [0, 0, 1, 1], [], []>} : vector<64x3xbf16>, vector<3x64xbf16>, vector<64x64xf32> -> vector<64x64xf32>
    %10 = arith.addf %5, %9 : vector<64x64xf32>
    %11 = vector.extract_strided_slice %4 {offsets = [64, 0], sizes = [64, 3], strides = [1, 1]} : vector<576x3xbf16> to vector<64x3xbf16>
    %c1 = arith.constant 1 : index
    %c0_9 = arith.constant 0 : index
    %c0_10 = arith.constant 0 : index
    %12 = vector.load %arg3[%c1, %c0_9, %c0_10] : memref<9x3x64xbf16, #tpu.memory_space<vmem>>, vector<1x3x64xbf16>
    %13 = vector.shape_cast %12 : vector<1x3x64xbf16> to vector<3x64xbf16>
    %cst_11 = arith.constant dense<0.000000e+00> : vector<64x64xf32>
    %14 = tpu.matmul %11, %13, %cst_11 {dimension_numbers = #tpu.dot_dimension_numbers<[1], [0], [0], [1], [0, 0, 1, 1], [], []>} : vector<64x3xbf16>, vector<3x64xbf16>, vector<64x64xf32> -> vector<64x64xf32>
    %15 = arith.addf %10, %14 : vector<64x64xf32>
    %16 = vector.extract_strided_slice %4 {offsets = [128, 0], sizes = [64, 3], strides = [1, 1]} : vector<576x3xbf16> to vector<64x3xbf16>
    %c2 = arith.constant 2 : index
    %c0_12 = arith.constant 0 : index
    %c0_13 = arith.constant 0 : index
    %17 = vector.load %arg3[%c2, %c0_12, %c0_13] : memref<9x3x64xbf16, #tpu.memory_space<vmem>>, vector<1x3x64xbf16>
    %18 = vector.shape_cast %17 : vector<1x3x64xbf16> to vector<3x64xbf16>
    %cst_14 = arith.constant dense<0.000000e+00> : vector<64x64xf32>
    %19 = tpu.matmul %16, %18, %cst_14 {dimension_numbers = #tpu.dot_dimension_numbers<[1], [0], [0], [1], [0, 0, 1, 1], [], []>} : vector<64x3xbf16>, vector<3x64xbf16>, vector<64x64xf32> -> vector<64x64xf32>
    %20 = arith.addf %15, %19 : vector<64x64xf32>
    %21 = vector.extract_strided_slice %4 {offsets = [192, 0], sizes = [64, 3], strides = [1, 1]} : vector<576x3xbf16> to vector<64x3xbf16>
    %c3 = arith.constant 3 : index
    %c0_15 = arith.constant 0 : index
    %c0_16 = arith.constant 0 : index
    %22 = vector.load %arg3[%c3, %c0_15, %c0_16] : memref<9x3x64xbf16, #tpu.memory_space<vmem>>, vector<1x3x64xbf16>
    %23 = vector.shape_cast %22 : vector<1x3x64xbf16> to vector<3x64xbf16>
    %cst_17 = arith.constant dense<0.000000e+00> : vector<64x64xf32>
    %24 = tpu.matmul %21, %23, %cst_17 {dimension_numbers = #tpu.dot_dimension_numbers<[1], [0], [0], [1], [0, 0, 1, 1], [], []>} : vector<64x3xbf16>, vector<3x64xbf16>, vector<64x64xf32> -> vector<64x64xf32>
    %25 = arith.addf %20, %24 : vector<64x64xf32>
    %26 = vector.extract_strided_slice %4 {offsets = [256, 0], sizes = [64, 3], strides = [1, 1]} : vector<576x3xbf16> to vector<64x3xbf16>
    %c4 = arith.constant 4 : index
    %c0_18 = arith.constant 0 : index
    %c0_19 = arith.constant 0 : index
    %27 = vector.load %arg3[%c4, %c0_18, %c0_19] : memref<9x3x64xbf16, #tpu.memory_space<vmem>>, vector<1x3x64xbf16>
    %28 = vector.shape_cast %27 : vector<1x3x64xbf16> to vector<3x64xbf16>
    %cst_20 = arith.constant dense<0.000000e+00> : vector<64x64xf32>
    %29 = tpu.matmul %26, %28, %cst_20 {dimension_numbers = #tpu.dot_dimension_numbers<[1], [0], [0], [1], [0, 0, 1, 1], [], []>} : vector<64x3xbf16>, vector<3x64xbf16>, vector<64x64xf32> -> vector<64x64xf32>
    %30 = arith.addf %25, %29 : vector<64x64xf32>
    %31 = vector.extract_strided_slice %4 {offsets = [320, 0], sizes = [64, 3], strides = [1, 1]} : vector<576x3xbf16> to vector<64x3xbf16>
    %c5 = arith.constant 5 : index
    %c0_21 = arith.constant 0 : index
    %c0_22 = arith.constant 0 : index
    %32 = vector.load %arg3[%c5, %c0_21, %c0_22] : memref<9x3x64xbf16, #tpu.memory_space<vmem>>, vector<1x3x64xbf16>
    %33 = vector.shape_cast %32 : vector<1x3x64xbf16> to vector<3x64xbf16>
    %cst_23 = arith.constant dense<0.000000e+00> : vector<64x64xf32>
    %34 = tpu.matmul %31, %33, %cst_23 {dimension_numbers = #tpu.dot_dimension_numbers<[1], [0], [0], [1], [0, 0, 1, 1], [], []>} : vector<64x3xbf16>, vector<3x64xbf16>, vector<64x64xf32> -> vector<64x64xf32>
    %35 = arith.addf %30, %34 : vector<64x64xf32>
    %36 = vector.extract_strided_slice %4 {offsets = [384, 0], sizes = [64, 3], strides = [1, 1]} : vector<576x3xbf16> to vector<64x3xbf16>
    %c6 = arith.constant 6 : index
    %c0_24 = arith.constant 0 : index
    %c0_25 = arith.constant 0 : index
    %37 = vector.load %arg3[%c6, %c0_24, %c0_25] : memref<9x3x64xbf16, #tpu.memory_space<vmem>>, vector<1x3x64xbf16>
    %38 = vector.shape_cast %37 : vector<1x3x64xbf16> to vector<3x64xbf16>
    %cst_26 = arith.constant dense<0.000000e+00> : vector<64x64xf32>
    %39 = tpu.matmul %36, %38, %cst_26 {dimension_numbers = #tpu.dot_dimension_numbers<[1], [0], [0], [1], [0, 0, 1, 1], [], []>} : vector<64x3xbf16>, vector<3x64xbf16>, vector<64x64xf32> -> vector<64x64xf32>
    %40 = arith.addf %35, %39 : vector<64x64xf32>
    %41 = vector.extract_strided_slice %4 {offsets = [448, 0], sizes = [64, 3], strides = [1, 1]} : vector<576x3xbf16> to vector<64x3xbf16>
    %c7 = arith.constant 7 : index
    %c0_27 = arith.constant 0 : index
    %c0_28 = arith.constant 0 : index
    %42 = vector.load %arg3[%c7, %c0_27, %c0_28] : memref<9x3x64xbf16, #tpu.memory_space<vmem>>, vector<1x3x64xbf16>
    %43 = vector.shape_cast %42 : vector<1x3x64xbf16> to vector<3x64xbf16>
    %cst_29 = arith.constant dense<0.000000e+00> : vector<64x64xf32>
    %44 = tpu.matmul %41, %43, %cst_29 {dimension_numbers = #tpu.dot_dimension_numbers<[1], [0], [0], [1], [0, 0, 1, 1], [], []>} : vector<64x3xbf16>, vector<3x64xbf16>, vector<64x64xf32> -> vector<64x64xf32>
    %45 = arith.addf %40, %44 : vector<64x64xf32>
    %46 = vector.extract_strided_slice %4 {offsets = [512, 0], sizes = [64, 3], strides = [1, 1]} : vector<576x3xbf16> to vector<64x3xbf16>
    %c8 = arith.constant 8 : index
    %c0_30 = arith.constant 0 : index
    %c0_31 = arith.constant 0 : index
    %47 = vector.load %arg3[%c8, %c0_30, %c0_31] : memref<9x3x64xbf16, #tpu.memory_space<vmem>>, vector<1x3x64xbf16>
    %48 = vector.shape_cast %47 : vector<1x3x64xbf16> to vector<3x64xbf16>
    %cst_32 = arith.constant dense<0.000000e+00> : vector<64x64xf32>
    %49 = tpu.matmul %46, %48, %cst_32 {dimension_numbers = #tpu.dot_dimension_numbers<[1], [0], [0], [1], [0, 0, 1, 1], [], []>} : vector<64x3xbf16>, vector<3x64xbf16>, vector<64x64xf32> -> vector<64x64xf32>
    %50 = arith.addf %45, %49 : vector<64x64xf32>
    %c0_33 = arith.constant 0 : index
    %c0_34 = arith.constant 0 : index
    %51 = vector.load %arg4[%c0_33, %c0_34] : memref<1x64xf32, #tpu.memory_space<vmem>>, vector<1x64xf32>
    %52 = vector.broadcast %51 : vector<1x64xf32> to vector<64x64xf32>
    %53 = arith.addf %50, %52 : vector<64x64xf32>
    %cst_35 = arith.constant 0.000000e+00 : f32
    %54 = vector.broadcast %cst_35 : f32 to vector<64x64xf32>
    %55 = arith.maximumf %53, %54 : vector<64x64xf32>
    %56 = arith.truncf %55 : vector<64x64xf32> to vector<64x64xbf16>
    %c0_36 = arith.constant 0 : index
    %c0_37 = arith.constant 0 : index
    %57 = vector.load %arg5[%c0_36, %c0_37] : memref<144x64xbf16, #tpu.memory_space<vmem>>, vector<144x64xbf16>
    %cst_38 = arith.constant dense<0.000000e+00> : vector<144x64xf32>
    %58 = tpu.matmul %57, %56, %cst_38 {dimension_numbers = #tpu.dot_dimension_numbers<[1], [0], [0], [1], [0, 0, 1, 1], [], []>} : vector<144x64xbf16>, vector<64x64xbf16>, vector<144x64xf32> -> vector<144x64xf32>
    %59 = arith.truncf %58 : vector<144x64xf32> to vector<144x64xbf16>
    %cst_39 = arith.constant 0.000000e+00 : f32
    %60 = vector.broadcast %cst_39 : f32 to vector<16x128xf32>
    %61 = vector.extract_strided_slice %59 {offsets = [0, 0], sizes = [16, 64], strides = [1, 1]} : vector<144x64xbf16> to vector<16x64xbf16>
    %c0_40 = arith.constant 0 : index
    %c0_41 = arith.constant 0 : index
    %c0_42 = arith.constant 0 : index
    %62 = vector.load %arg6[%c0_40, %c0_41, %c0_42] : memref<9x64x128xbf16, #tpu.memory_space<vmem>>, vector<1x64x128xbf16>
    %63 = vector.shape_cast %62 : vector<1x64x128xbf16> to vector<64x128xbf16>
    %cst_43 = arith.constant dense<0.000000e+00> : vector<16x128xf32>
    %64 = tpu.matmul %61, %63, %cst_43 {dimension_numbers = #tpu.dot_dimension_numbers<[1], [0], [0], [1], [0, 0, 1, 1], [], []>} : vector<16x64xbf16>, vector<64x128xbf16>, vector<16x128xf32> -> vector<16x128xf32>
    %65 = arith.addf %60, %64 : vector<16x128xf32>
    %66 = vector.extract_strided_slice %59 {offsets = [16, 0], sizes = [16, 64], strides = [1, 1]} : vector<144x64xbf16> to vector<16x64xbf16>
    %c1_44 = arith.constant 1 : index
    %c0_45 = arith.constant 0 : index
    %c0_46 = arith.constant 0 : index
    %67 = vector.load %arg6[%c1_44, %c0_45, %c0_46] : memref<9x64x128xbf16, #tpu.memory_space<vmem>>, vector<1x64x128xbf16>
    %68 = vector.shape_cast %67 : vector<1x64x128xbf16> to vector<64x128xbf16>
    %cst_47 = arith.constant dense<0.000000e+00> : vector<16x128xf32>
    %69 = tpu.matmul %66, %68, %cst_47 {dimension_numbers = #tpu.dot_dimension_numbers<[1], [0], [0], [1], [0, 0, 1, 1], [], []>} : vector<16x64xbf16>, vector<64x128xbf16>, vector<16x128xf32> -> vector<16x128xf32>
    %70 = arith.addf %65, %69 : vector<16x128xf32>
    %71 = vector.extract_strided_slice %59 {offsets = [32, 0], sizes = [16, 64], strides = [1, 1]} : vector<144x64xbf16> to vector<16x64xbf16>
    %c2_48 = arith.constant 2 : index
    %c0_49 = arith.constant 0 : index
    %c0_50 = arith.constant 0 : index
    %72 = vector.load %arg6[%c2_48, %c0_49, %c0_50] : memref<9x64x128xbf16, #tpu.memory_space<vmem>>, vector<1x64x128xbf16>
    %73 = vector.shape_cast %72 : vector<1x64x128xbf16> to vector<64x128xbf16>
    %cst_51 = arith.constant dense<0.000000e+00> : vector<16x128xf32>
    %74 = tpu.matmul %71, %73, %cst_51 {dimension_numbers = #tpu.dot_dimension_numbers<[1], [0], [0], [1], [0, 0, 1, 1], [], []>} : vector<16x64xbf16>, vector<64x128xbf16>, vector<16x128xf32> -> vector<16x128xf32>
    %75 = arith.addf %70, %74 : vector<16x128xf32>
    %76 = vector.extract_strided_slice %59 {offsets = [48, 0], sizes = [16, 64], strides = [1, 1]} : vector<144x64xbf16> to vector<16x64xbf16>
    %c3_52 = arith.constant 3 : index
    %c0_53 = arith.constant 0 : index
    %c0_54 = arith.constant 0 : index
    %77 = vector.load %arg6[%c3_52, %c0_53, %c0_54] : memref<9x64x128xbf16, #tpu.memory_space<vmem>>, vector<1x64x128xbf16>
    %78 = vector.shape_cast %77 : vector<1x64x128xbf16> to vector<64x128xbf16>
    %cst_55 = arith.constant dense<0.000000e+00> : vector<16x128xf32>
    %79 = tpu.matmul %76, %78, %cst_55 {dimension_numbers = #tpu.dot_dimension_numbers<[1], [0], [0], [1], [0, 0, 1, 1], [], []>} : vector<16x64xbf16>, vector<64x128xbf16>, vector<16x128xf32> -> vector<16x128xf32>
    %80 = arith.addf %75, %79 : vector<16x128xf32>
    %81 = vector.extract_strided_slice %59 {offsets = [64, 0], sizes = [16, 64], strides = [1, 1]} : vector<144x64xbf16> to vector<16x64xbf16>
    %c4_56 = arith.constant 4 : index
    %c0_57 = arith.constant 0 : index
    %c0_58 = arith.constant 0 : index
    %82 = vector.load %arg6[%c4_56, %c0_57, %c0_58] : memref<9x64x128xbf16, #tpu.memory_space<vmem>>, vector<1x64x128xbf16>
    %83 = vector.shape_cast %82 : vector<1x64x128xbf16> to vector<64x128xbf16>
    %cst_59 = arith.constant dense<0.000000e+00> : vector<16x128xf32>
    %84 = tpu.matmul %81, %83, %cst_59 {dimension_numbers = #tpu.dot_dimension_numbers<[1], [0], [0], [1], [0, 0, 1, 1], [], []>} : vector<16x64xbf16>, vector<64x128xbf16>, vector<16x128xf32> -> vector<16x128xf32>
    %85 = arith.addf %80, %84 : vector<16x128xf32>
    %86 = vector.extract_strided_slice %59 {offsets = [80, 0], sizes = [16, 64], strides = [1, 1]} : vector<144x64xbf16> to vector<16x64xbf16>
    %c5_60 = arith.constant 5 : index
    %c0_61 = arith.constant 0 : index
    %c0_62 = arith.constant 0 : index
    %87 = vector.load %arg6[%c5_60, %c0_61, %c0_62] : memref<9x64x128xbf16, #tpu.memory_space<vmem>>, vector<1x64x128xbf16>
    %88 = vector.shape_cast %87 : vector<1x64x128xbf16> to vector<64x128xbf16>
    %cst_63 = arith.constant dense<0.000000e+00> : vector<16x128xf32>
    %89 = tpu.matmul %86, %88, %cst_63 {dimension_numbers = #tpu.dot_dimension_numbers<[1], [0], [0], [1], [0, 0, 1, 1], [], []>} : vector<16x64xbf16>, vector<64x128xbf16>, vector<16x128xf32> -> vector<16x128xf32>
    %90 = arith.addf %85, %89 : vector<16x128xf32>
    %91 = vector.extract_strided_slice %59 {offsets = [96, 0], sizes = [16, 64], strides = [1, 1]} : vector<144x64xbf16> to vector<16x64xbf16>
    %c6_64 = arith.constant 6 : index
    %c0_65 = arith.constant 0 : index
    %c0_66 = arith.constant 0 : index
    %92 = vector.load %arg6[%c6_64, %c0_65, %c0_66] : memref<9x64x128xbf16, #tpu.memory_space<vmem>>, vector<1x64x128xbf16>
    %93 = vector.shape_cast %92 : vector<1x64x128xbf16> to vector<64x128xbf16>
    %cst_67 = arith.constant dense<0.000000e+00> : vector<16x128xf32>
    %94 = tpu.matmul %91, %93, %cst_67 {dimension_numbers = #tpu.dot_dimension_numbers<[1], [0], [0], [1], [0, 0, 1, 1], [], []>} : vector<16x64xbf16>, vector<64x128xbf16>, vector<16x128xf32> -> vector<16x128xf32>
    %95 = arith.addf %90, %94 : vector<16x128xf32>
    %96 = vector.extract_strided_slice %59 {offsets = [112, 0], sizes = [16, 64], strides = [1, 1]} : vector<144x64xbf16> to vector<16x64xbf16>
    %c7_68 = arith.constant 7 : index
    %c0_69 = arith.constant 0 : index
    %c0_70 = arith.constant 0 : index
    %97 = vector.load %arg6[%c7_68, %c0_69, %c0_70] : memref<9x64x128xbf16, #tpu.memory_space<vmem>>, vector<1x64x128xbf16>
    %98 = vector.shape_cast %97 : vector<1x64x128xbf16> to vector<64x128xbf16>
    %cst_71 = arith.constant dense<0.000000e+00> : vector<16x128xf32>
    %99 = tpu.matmul %96, %98, %cst_71 {dimension_numbers = #tpu.dot_dimension_numbers<[1], [0], [0], [1], [0, 0, 1, 1], [], []>} : vector<16x64xbf16>, vector<64x128xbf16>, vector<16x128xf32> -> vector<16x128xf32>
    %100 = arith.addf %95, %99 : vector<16x128xf32>
    %101 = vector.extract_strided_slice %59 {offsets = [128, 0], sizes = [16, 64], strides = [1, 1]} : vector<144x64xbf16> to vector<16x64xbf16>
    %c8_72 = arith.constant 8 : index
    %c0_73 = arith.constant 0 : index
    %c0_74 = arith.constant 0 : index
    %102 = vector.load %arg6[%c8_72, %c0_73, %c0_74] : memref<9x64x128xbf16, #tpu.memory_space<vmem>>, vector<1x64x128xbf16>
    %103 = vector.shape_cast %102 : vector<1x64x128xbf16> to vector<64x128xbf16>
    %cst_75 = arith.constant dense<0.000000e+00> : vector<16x128xf32>
    %104 = tpu.matmul %101, %103, %cst_75 {dimension_numbers = #tpu.dot_dimension_numbers<[1], [0], [0], [1], [0, 0, 1, 1], [], []>} : vector<16x64xbf16>, vector<64x128xbf16>, vector<16x128xf32> -> vector<16x128xf32>
    %105 = arith.addf %100, %104 : vector<16x128xf32>
    %c0_76 = arith.constant 0 : index
    %c0_77 = arith.constant 0 : index
    %106 = vector.load %arg7[%c0_76, %c0_77] : memref<1x128xf32, #tpu.memory_space<vmem>>, vector<1x128xf32>
    %107 = vector.broadcast %106 : vector<1x128xf32> to vector<16x128xf32>
    %108 = arith.addf %105, %107 : vector<16x128xf32>
    %cst_78 = arith.constant 0.000000e+00 : f32
    %109 = vector.broadcast %cst_78 : f32 to vector<16x128xf32>
    %110 = arith.maximumf %108, %109 : vector<16x128xf32>
    %111 = arith.truncf %110 : vector<16x128xf32> to vector<16x128xbf16>
    %c0_79 = arith.constant 0 : index
    %c0_80 = arith.constant 0 : index
    %112 = vector.load %arg8[%c0_79, %c0_80] : memref<64x16xbf16, #tpu.memory_space<vmem>>, vector<64x16xbf16>
    %cst_81 = arith.constant dense<0.000000e+00> : vector<64x128xf32>
    %113 = tpu.matmul %112, %111, %cst_81 {dimension_numbers = #tpu.dot_dimension_numbers<[1], [0], [0], [1], [0, 0, 1, 1], [], []>} : vector<64x16xbf16>, vector<16x128xbf16>, vector<64x128xf32> -> vector<64x128xf32>
    %c0_82 = arith.constant 0 : index
    %c0_83 = arith.constant 0 : index
    %114 = vector.load %arg9[%c0_82, %c0_83] : memref<64x1xf32, #tpu.memory_space<vmem>>, vector<64x1xf32>
    %115 = vector.broadcast %114 : vector<64x1xf32> to vector<64x128xf32>
    %116 = arith.addf %113, %115 : vector<64x128xf32>
    %c0_84 = arith.constant 0 : index
    %c0_85 = arith.constant 0 : index
    %c0_86 = arith.constant 0 : index
    %117 = vector.load %arg10[%c0_84, %c0_85, %c0_86] : memref<1x64x128xf32, #tpu.memory_space<vmem>>, vector<1x64x128xf32>
    %118 = vector.shape_cast %117 : vector<1x64x128xf32> to vector<64x128xf32>
    %119 = vector.shape_cast %116 : vector<64x128xf32> to vector<1x64x128xf32>
    tpu.vector_store %arg10[%c0_84, %c0_85, %c0_86], %119 {strides = array<i32>} : memref<1x64x128xf32, #tpu.memory_space<vmem>>, vector<1x64x128xf32>,
    return
  }
  func.func @transform_0(%arg0: i32) -> (i32, i32, i32) {
    %c0_i32 = arith.constant 0 : i32
    %c0_i32_0 = arith.constant 0 : i32
    %c0_i32_1 = arith.constant 0 : i32
    return %arg0, %c0_i32, %c0_i32_0 : i32, i32, i32
  }
  func.func @transform_1(%arg0: i32) -> (i32, i32) {
    %c0_i32 = arith.constant 0 : i32
    %c0_i32_0 = arith.constant 0 : i32
    %c0_i32_1 = arith.constant 0 : i32
    return %c0_i32, %c0_i32_0 : i32, i32
  }
  func.func @transform_2(%arg0: i32) -> (i32, i32, i32) {
    %c0_i32 = arith.constant 0 : i32
    %c0_i32_0 = arith.constant 0 : i32
    %c0_i32_1 = arith.constant 0 : i32
    %c0_i32_2 = arith.constant 0 : i32
    return %c0_i32, %c0_i32_0, %c0_i32_1 : i32, i32, i32
  }
  func.func @transform_3(%arg0: i32) -> (i32, i32) {
    %c0_i32 = arith.constant 0 : i32
    %c0_i32_0 = arith.constant 0 : i32
    %c0_i32_1 = arith.constant 0 : i32
    return %c0_i32, %c0_i32_0 : i32, i32
  }
  func.func @transform_4(%arg0: i32) -> (i32, i32) {
    %c0_i32 = arith.constant 0 : i32
    %c0_i32_0 = arith.constant 0 : i32
    %c0_i32_1 = arith.constant 0 : i32
    return %c0_i32, %c0_i32_0 : i32, i32
  }
  func.func @transform_5(%arg0: i32) -> (i32, i32, i32) {
    %c0_i32 = arith.constant 0 : i32
    %c0_i32_0 = arith.constant 0 : i32
    %c0_i32_1 = arith.constant 0 : i32
    %c0_i32_2 = arith.constant 0 : i32
    return %c0_i32, %c0_i32_0, %c0_i32_1 : i32, i32, i32
  }
  func.func @transform_6(%arg0: i32) -> (i32, i32) {
    %c0_i32 = arith.constant 0 : i32
    %c0_i32_0 = arith.constant 0 : i32
    %c0_i32_1 = arith.constant 0 : i32
    return %c0_i32, %c0_i32_0 : i32, i32
  }
  func.func @transform_7(%arg0: i32) -> (i32, i32) {
    %c0_i32 = arith.constant 0 : i32
    %c0_i32_0 = arith.constant 0 : i32
    %c0_i32_1 = arith.constant 0 : i32
    return %c0_i32, %c0_i32_0 : i32, i32
  }
  func.func @transform_8(%arg0: i32) -> (i32, i32) {
    %c0_i32 = arith.constant 0 : i32
    %c0_i32_0 = arith.constant 0 : i32
    %c0_i32_1 = arith.constant 0 : i32
    return %c0_i32, %c0_i32_0 : i32, i32
  }
  func.func @transform_9(%arg0: i32) -> (i32, i32, i32) {
    %c0_i32 = arith.constant 0 : i32
    %c0_i32_0 = arith.constant 0 : i32
    %c0_i32_1 = arith.constant 0 : i32
    return %arg0, %c0_i32, %c0_i32_0 : i32, i32, i32
  }
}

</mosaic_0001>

<bundles_post_ra>
// kernel: _lambda_.1
= control target key start
LH: loop header
LB: loop body
LE: loop exit
PB: predicated region body
PF: predicated region fallthrough
CT: control target
= control target key end

     0   :  { %14 = vsyncpa [#allocation3], 0  ;;  %s4951_s0 = inlined_call_operand.vmem [shape: bf16[2,256,3], index: 0, kind: input, shape index: {}]   ;;  %s4952_s1 = inlined_call_operand.hbm [shape: bf16[576,256], index: 1, kind: input, shape index: {}]   ;;  %s4953_s2 = inlined_call_operand.hbm [shape: bf16[9,3,64], index: 2, kind: input, shape index: {}]   ;;  %s4954_s3 = inlined_call_operand.vmem [shape: f32[1,64], index: 3, kind: input, shape index: {}]   ;;  %s4955_s4 = inlined_call_operand.vmem [shape: bf16[144,64], index: 4, kind: input, shape index: {}]   ;;  %s4956_s5 = inlined_call_operand.vmem [shape: bf16[9,64,128], index: 5, kind: input, shape index: {}]   ;;  %s4957_s6 = inlined_call_operand.vmem [shape: f32[1,128], index: 6, kind: input, shape index: {}]   ;;  %s4958_s7 = inlined_call_operand.vmem [shape: bf16[64,16], index: 7, kind: input, shape index: {}]   ;;  %s4959_s8 = inlined_call_operand.vmem [shape: f32[64,1], index: 8, kind: input, shape index: {}]   ;;  %s4960_s9 = inlined_call_operand.hbm [shape: f32[2,64,128], index: 9, kind: output, shape index: {}]  }
   0x1   :  { %15 = vsyncpa [#allocation6], 0 }
   0x2   :  { %16 = vsyncpa [#allocation4], 0 }
   0x3   :  { %18 = vsyncpa [#allocation4 + $0x1], 0  ;;  %s4358_s30 = smov 0   ;;  %s4360_s10 = smov 0  }
   0x4   :  { %s4362_s11 = smov 0   ;;  %s4364_s12 = smov 0  }
   0x5 LB: > { %s4379_s13 = sadd.s32 4294967295, %s4293_s12   ;;  %s3287_s14 = sadd.s32 4294967294, %s4293_s12   ;;  %s4293_s12 = sphi %s4364_s12, %s4976_s12   ;;  %s4289_s11 = sphi %s4362_s11, %s4975_s11   ;;  %s4285_s10 = sphi %s4360_s10, %s4974_s10   ;;  %s4281_s30 = sphi %s4358_s30, %s4973_s30  }
   0x6   : > { %s4383_s15 = sadd.s32 1, %s4293_s12   ;;  %s225_s16 = sadd.s32 1, %s4289_s11 }
   0x7   : > { %s222_s17 = ssub.s32 %s4293_s12, %s4383_s15  ;;  %p235_p0 = scmp.ne.s32.totalorder %s4289_s11, %s4285_s10 }
   0x8   : > { %p223_p1 = scmp.eq.s32.totalorder %s222_s17, 0  ;;  %p236_p2 = scmp.eq.s32.totalorder %s4379_s13, 1 }
   0x9   : > { %p241_p3 = scmp.ne.s32.totalorder %s4285_s10, %s4281_s30  ;;  %p242_p4 = scmp.eq.s32.totalorder %s3287_s14, 1 }
   0xa   : > { %s4394_s18 = scalar_select %p223_p1, %s4289_s11, %s225_s16  }
   0xb   : > { %p4396_p5 = por %p236_p2, %p235_p0  ;;  %p4400_p6 = por %p242_p4, %p241_p3 }
   0xc   : > { %4962 = sst [smem:[#allocation11_spill]] %s4394_s18  ;;  %p3288_p7 = scmp.ge.s32.totalorder %s4293_s12, 1 }
   0xd   : > { %s4964_s20 = scalar_select %p4400_p6, 1, 0 }
   0xe   : > { %p249_p8 = scmp.lt.s32.totalorder %s4293_s12, 3  ;;  %p4961_p9 = scmp.eq.s32.totalorder %s4379_s13, 0 }
   0xf   : > { %s4295_s22 = smov [#allocation2]   ;;  %s4296_s25 = smov [#allocation5]  }
  0x10   : > { %p4407_p10 = pnand %p3288_p7, %p249_p8  ;;  %s261_s23 = sshll.u32 %s4295_s22, 4  ;;  %s262_s23 = int_to_ptr.vmem [resolvable:$true] %s261_s23 }
  0x11   : > { %s274_s26 = sshll.u32 %s4296_s25, 4  ;;  %s4184_s27 = scalar_lea.vmem %s262_s23, 9216  ;;  %s275_s26 = int_to_ptr.vmem [resolvable:$true] %s274_s26 }
  0x12   : > { %p3938_p11 = pneg %p4407_p10  ;;  %p4185_p0 = scmp.ne.s32.totalorder %s262_s23, %s4184_s27 }
  0x13   : > { %p4192_p3 = scmp.lt.s32.totalorder %s262_s23, %s262_s23  ;;  %p4193_p4 = scmp.lt.s32.totalorder %s4184_s27, %s4184_s27 }
  0x14   : > { %p4415_p12 = pnand %p4961_p9, %p3938_p11 }
  0x15   : > { %p4194_p7 = por %p4193_p4, %p4192_p3 }
  0x16   : > { %p4175_p13 = pneg %p4415_p12 }
  0x18   : > { %p4187_p1 = pnand %p4185_p0, %p4175_p13 }
  0x1a   : > { %p4188_p2 = pneg %p4187_p1 }
  0x1c   : > { %p4195_p8 = pnand %p4194_p7, %p4188_p2 }
  0x1e   : > { %4198 = shalt.err (!%p4195_p8)
}
  0x1f   : > { %s4297_s28 = smov 128   ;;  %s4298_s29 = smov 8  }
  0x20   : > { %3941 = dma.hbm_to_vmem [thread:$0]  (!%p4415_p12), %s4952_s1, 9216, %s262_s23, [#allocation3], %s4297_s28, %s4297_s28, %s4298_s29  }
  0x21   : > { %s4210_s17 = scalar_lea.vmem %s275_s26, 288  ;;  %p4218_p9 = scmp.lt.s32.totalorder %s275_s26, %s275_s26 }
  0x22   : > { %p4211_p11 = scmp.ne.s32.totalorder %s275_s26, %s4210_s17  ;;  %p4219_p6 = scmp.lt.s32.totalorder %s4210_s17, %s4210_s17 }
  0x24   : > { %p4213_p0 = pnand %p4211_p11, %p4175_p13  ;;  %p4220_p3 = por %p4219_p6, %p4218_p9 }
  0x26   : > { %p4214_p1 = pneg %p4213_p0 }
  0x28   : > { %p4221_p2 = pnand %p4220_p3, %p4214_p1 }
  0x2a   : > { %4224 = shalt.err (!%p4221_p2)
}
  0x2b   : > { %s4299_s22 = smov 32   ;;  %s4300_s25 = smov 2  }
  0x2c   : > { %3944 = dma.hbm_to_vmem [thread:$0]  (!%p4415_p12), %s4953_s2, 288, %s275_s26, [#allocation6], %s4299_s22, %s4299_s22, %s4300_s25  }
  0x2d   : > { %316 = sbr.rel (%p4407_p10) target bundleno = 1582 (0x62e), region = 56  ;;  %p4967_p4 = scmp.eq.s32.totalorder (!%p4407_p10), %s4379_s13, 0 }
  0x32   : > { %4268 = dma.done.wait (%p4967_p4), [#allocation3], 9216   ;;  %p4968_p13 = pmov %p4967_p4 }
  0x33   : > { %p4969_p6 = pmov %p4967_p4 }
  0x34   : > { %4270 = vsyncadd (%p4968_p13), [#allocation3], 4294958080 }
  0x35   : > { %4272 = dma.done.wait (%p4969_p6), [#allocation6], 288   ;;  %p4970_p9 = pmov %p4967_p4 }
  0x36   : > { %p356_p7 = scmp.lt.s32.totalorder %s4379_s13, 1  ;;  %v4301_v0 = vmov 0   ;;  %v4018_v6 = vld [vmem:[#allocation2 + $0x4] ss:$8 sps:$4 sm:$0xff]   ;;  %v4016_v18 = vld [vmem:[#allocation2] ss:$8 sps:$4 sm:$0xff]  }
  0x37   : > { %4274 = vsyncadd (%p4970_p9), [#allocation6], 4294967008  ;;  %922 = vmatprep.subr.bf16.mxu0 %v4301_v0  ;;  %3999 = vset.pattern.permute.xlu1 %v4301_v0  ;;  %v4019_v19 = vld [vmem:[#allocation2 + $0x14] ss:$8 sps:$4 sm:$0xff]   ;;  %v4021_v20 = vld [vmem:[#allocation2 + $0x10] ss:$8 sps:$4 sm:$0xff]  }
  0x38   : > { %s357_s18 = scalar_select %p356_p7, %s4379_s13, 1  ;;  %3998 = vset.pattern.permute.xlu0 %v4301_v0  ;;  %954 = vmatprep.mubr.bf16.mxu0 %v4018_v6  ;;  %v4022_v21 = vld [vmem:[#allocation2 + $0x24] ss:$8 sps:$4 sm:$0xff]   ;;  %v4024_v22 = vld [vmem:[#allocation2 + $0x20] ss:$8 sps:$4 sm:$0xff]   ;;  %vm1295_vm0 = vcmask 1040384  }
  0x39   : > { %v4025_v23 = vld [vmem:[#allocation2 + $0x34] ss:$8 sps:$4 sm:$0xff]   ;;  %v4027_v24 = vld [vmem:[#allocation2 + $0x30] ss:$8 sps:$4 sm:$0xff]   ;;  %v4028_v25 = vld [vmem:[#allocation2 + $0x44] ss:$8 sps:$4 sm:$0xff]  }
  0x3a   : > { %s3564_s21 = sshll.u32 %s357_s18, 7  ;;  %v4030_v26 = vld [vmem:[#allocation2 + $0x40] ss:$8 sps:$4 sm:$0xff]   ;;  %v4031_v27 = vld [vmem:[#allocation2 + $0x54] ss:$8 sps:$4 sm:$0xff]   ;;  %vm1296_vm1 = vcmask 1041408  }
  0x3b   : > { %s4452_s26 = scalar_lea.vmem %s4951_s0, %s3564_s21  ;;  %v4033_v28 = vld [vmem:[#allocation2 + $0x50] ss:$8 sps:$4 sm:$0xff]   ;;  %v4034_v29 = vld [vmem:[#allocation2 + $0x64] ss:$8 sps:$4 sm:$0xff]   ;;  %v4036_v30 = vld [vmem:[#allocation2 + $0x60] ss:$8 sps:$4 sm:$0xff]  }
  0x3c   : > { %v4000_v1 = vld [vmem:[%s4452_s26 + $0x38] sm:$0xff]   ;;  %v4001_v2 = vld [vmem:[%s4452_s26 + $0x30] sm:$0xff]   ;;  %v4002_v3 = vld [vmem:[%s4452_s26 + $0x28] sm:$0xff]   ;;  %v4302_v46 = vmov 65535   ;;  %vm1282_vm2 = vcmask 23552   ;;  %vm4304_vm3 = vmmov 0  }
  0x3d   : > { %923 = vmatpush1.bf16.msra.mxu0 %v4000_v1  ;;  %v4003_v4 = vld [vmem:[%s4452_s26 + $0x20] sm:$0xff]   ;;  %v4004_v5 = vld [vmem:[%s4452_s26 + $0x18] sm:$0xff]   ;;  %v4005_v7 = vld [vmem:[%s4452_s26 + $0x10] sm:$0xff]   ;;  %v1297_v47 = vsel %vm1295_vm0, 4294967295, %v4302_v46  ;;  %vm2167_vm4 = vcmask 523264   ;;  %vm3103_vm5 = vcmask 130048  }
  0x3e   : > { %924 = vmatprep.subr.bf16.mxu0 %v4301_v0  ;;  %v4006_v8 = vld [vmem:[%s4452_s26 + $0x8] sm:$0xff]   ;;  %v4007_v9 = vld [vmem:[%s4452_s26] sm:$0xff]   ;;  %v4008_v10 = vld [vmem:[%s4452_s26 + $0x78] sm:$0xff]   ;;  %v4470_v49 = vsel %vm1296_vm1, %v1297_v47, 0  ;;  %s353_s29 = sand.u32 1, %s4285_s10   ;;  %s3565_s22 = sshll.u32 %s4379_s13, 10 }
  0x3f   : > { %v4009_v11 = vld [vmem:[%s4452_s26 + $0x70] sm:$0xff]   ;;  %v4010_v12 = vld [vmem:[%s4452_s26 + $0x68] sm:$0xff]   ;;  %v4011_v13 = vld [vmem:[%s4452_s26 + $0x60] sm:$0xff]   ;;  %s3295_s14 = sshll.u32 %s353_s29, 6  ;;  %s4907_s18 = scalar_lea.hbm %s4960_s9, %s3565_s22 }
  0x40   : > { %v4012_v14 = vld [vmem:[%s4452_s26 + $0x58] sm:$0xff]   ;;  %v4013_v15 = vld [vmem:[%s4452_s26 + $0x50] sm:$0xff]   ;;  %v4014_v16 = vld [vmem:[%s4452_s26 + $0x48] sm:$0xff]   ;;  %s355_s16 = scalar_lea.vmem [#allocation7], %s3295_s14  ;;  %s4911_s13 = scalar_lea.sflag [#allocation4], %s353_s29 }
  0x41   : > { %925 = vmatpush1.bf16.msra.mxu0 %v4001_v2  ;;  %v4015_v17 = vld [vmem:[%s4452_s26 + $0x40] sm:$0xff]   ;;  %v4037_v31 = vld [vmem:[#allocation2 + $0x74] ss:$8 sps:$4 sm:$0xff]   ;;  %v4039_v32 = vld [vmem:[#allocation2 + $0x70] ss:$8 sps:$4 sm:$0xff]   ;;  %s3203_s17 = sshll.u32 %s355_s16, 4  ;;  %s4902_s17 = int_to_ptr.vmem [resolvable:$true] %s3203_s17 }
  0x42   : > { %926 = vmatprep.subr.bf16.mxu0 %v4301_v0  ;;  %v4040_v33 = vld [vmem:[#allocation2 + $0x84] ss:$8 sps:$4 sm:$0xff]   ;;  %v4042_v34 = vld [vmem:[#allocation2 + $0x80] ss:$8 sps:$4 sm:$0xff]   ;;  %v4043_v35 = vld [vmem:[#allocation2 + $0x94] ss:$8 sps:$4 sm:$0xff]  }
  0x43   : > { %v4045_v36 = vld [vmem:[#allocation2 + $0x90] ss:$8 sps:$4 sm:$0xff]   ;;  %v4046_v37 = vld [vmem:[#allocation2 + $0xa4] ss:$8 sps:$4 sm:$0xff]   ;;  %v4048_v38 = vld [vmem:[#allocation2 + $0xa0] ss:$8 sps:$4 sm:$0xff]  }
  0x44   : > { %v4049_v39 = vld [vmem:[#allocation2 + $0xb4] ss:$8 sps:$4 sm:$0xff]   ;;  %v4051_v40 = vld [vmem:[#allocation2 + $0xb0] ss:$8 sps:$4 sm:$0xff]   ;;  %v4052_v41 = vld [vmem:[#allocation2 + $0xc4] ss:$8 sps:$4 sm:$0xff]  }
  0x45   : > { %927 = vmatpush1.bf16.msra.mxu0 %v4002_v3  ;;  %v4054_v42 = vld [vmem:[#allocation2 + $0xc0] ss:$8 sps:$4 sm:$0xff]   ;;  %v4055_v43 = vld [vmem:[#allocation2 + $0xd4] ss:$8 sps:$4 sm:$0xff]   ;;  %v4057_v44 = vld [vmem:[#allocation2 + $0xd0] ss:$8 sps:$4 sm:$0xff]  }
  0x46   : > { %928 = vmatprep.subr.bf16.mxu0 %v4301_v0  ;;  %v4058_v45 = vld [vmem:[#allocation2 + $0xe4] ss:$8 sps:$4 sm:$0xff]   ;;  %v1281_v48 = vld [vmem:[#allocation5 + $0x2] sm:$0x3]  ;;  %v4061_v52 = vld [vmem:[#allocation2 + $0xf4] ss:$8 sps:$4 sm:$0xff]  }
  0x47   : > { %v1300_v50 = vand.u32 %v4470_v49, %v1281_v48  ;;  %v4060_v51 = vld [vmem:[#allocation2 + $0xe0] ss:$8 sps:$4 sm:$0xff]   ;;  %v4063_v53 = vld [vmem:[#allocation2 + $0xf0] ss:$8 sps:$4 sm:$0xff]   ;;  %v4064_v54 = vld [vmem:[#allocation2 + $0x104] ss:$8 sps:$4 sm:$0xff]  }
  0x48   : > { %v4066_v55 = vld [vmem:[#allocation2 + $0x100] ss:$8 sps:$4 sm:$0xff]   ;;  %v4067_v56 = vld [vmem:[#allocation2 + $0x114] ss:$8 sps:$4 sm:$0xff]   ;;  %v4069_v59 = vld [vmem:[#allocation2 + $0x110] ss:$8 sps:$4 sm:$0xff]  }
  0x49   : > { %929 = vmatpush1.bf16.msra.mxu0 %v4003_v4  ;;  %3674 = vmatprep.subr.bf16.mxu1 %v1300_v50  ;;  %v1279_v57 = vld [vmem:[#allocation5] sm:$0x3]  ;;  %v4070_v60 = vld [vmem:[#allocation2 + $0x124] ss:$8 sps:$4 sm:$0xff]   ;;  %v4073_v62 = vld [vmem:[#allocation2 + $0x134] ss:$8 sps:$4 sm:$0xff]  }
  0x4a   : > { %930 = vmatprep.subr.bf16.mxu0 %v4301_v0  ;;  %3675 = vmatpush3.bf16.msra.mxu1 %v1300_v50  ;;  %v4474_v58 = vand.u32 %v4470_v49, %v1279_v57  ;;  %v4072_v61 = vld [vmem:[#allocation2 + $0x120] ss:$8 sps:$4 sm:$0xff]   ;;  %v4075_v63 = vld [vmem:[#allocation2 + $0x130] ss:$8 sps:$4 sm:$0xff]   ;;  %v4079_v2 = vld [vmem:[#allocation2 + $0x154] ss:$8 sps:$4 sm:$0xff]  }
  0x4b   : > { %v4078_v1 = vld [vmem:[#allocation2 + $0x140] ss:$8 sps:$4 sm:$0xff]   ;;  %v4081_v3 = vld [vmem:[#allocation2 + $0x150] ss:$8 sps:$4 sm:$0xff]   ;;  %v4082_v4 = vld [vmem:[#allocation2 + $0x164] ss:$8 sps:$4 sm:$0xff]  }
  0x4c   : > { %3684 = vmatprep.subr.bf16.mxu1 %v4474_v58  ;;  %v4085_v6 = vld [vmem:[#allocation2 + $0x174] ss:$8 sps:$4 sm:$0xff]   ;;  %v4106_v46 = vld [vmem:[#allocation2 + $0x1e0] ss:$8 sps:$4 sm:$0xff]   ;;  %v4114_v57 = vld [vmem:[#allocation2 + $0x204] ss:$8 sps:$4 sm:$0xff]  }
  0x4d   : > { %931 = vmatpush1.bf16.msra.mxu0 %v4004_v5  ;;  %v4084_v5 = vld [vmem:[#allocation2 + $0x160] ss:$8 sps:$4 sm:$0xff]   ;;  %v4111_v48 = vld [vmem:[#allocation2 + $0x1f4] ss:$8 sps:$4 sm:$0xff]   ;;  %s4225_s21 = scalar_lea.vmem %s4902_s17, 1024  ;;  %s4305_s23 = smov [#allocation7]  }
  0x4e   : > { %932 = vmatprep.subr.bf16.mxu0 %v4301_v0  ;;  %p4226_p10 = scmp.ne.s32.totalorder %s4902_s17, %s4225_s21  ;;  %s4229_s24 = sshll.u32 %s4305_s23, 4  ;;  %s4230_s24 = int_to_ptr.vmem [resolvable:$false] %s4229_s24 }
  0x4f   : > { %s4231_s26 = scalar_lea.vmem %s4230_s24, 2048  ;;  %p4232_p11 = scmp.lt.s32.totalorder %s4902_s17, %s4230_s24 }
  0x50   : > { %p4227_p12 = pnand %p4226_p10, %p4396_p5  ;;  %p4233_p0 = scmp.lt.s32.totalorder %s4231_s26, %s4225_s21 }
  0x51   : > { %933 = vmatpush1.bf16.msra.mxu0 %v4005_v7  ;;  %v4087_v7 = vld [vmem:[#allocation2 + $0x170] ss:$8 sps:$4 sm:$0xff]  }
  0x52   : > { %934 = vmatprep.subr.bf16.mxu0 %v4301_v0  ;;  %p4228_p8 = pneg %p4227_p12  ;;  %p4234_p1 = por %p4233_p0, %p4232_p11 }
  0x54   : > { %p4235_p3 = pnand %p4234_p1, %p4228_p8 }
  0x55   : > { %935 = vmatpush1.bf16.msra.mxu0 %v4006_v8  ;;  %v4088_v8 = vld [vmem:[#allocation2 + $0x184] ss:$8 sps:$4 sm:$0xff]  }
  0x56   : > { %936 = vmatprep.subr.bf16.mxu0 %v4301_v0 }
  0x59   : > { %937 = vmatpush1.bf16.msra.mxu0 %v4007_v9  ;;  %v4090_v9 = vld [vmem:[#allocation2 + $0x180] ss:$8 sps:$4 sm:$0xff]  }
  0x5a   : > { %938 = vmatprep.subr.bf16.mxu0 %v4301_v0 }
  0x5d   : > { %939 = vmatpush2.bf16.msra.mxu0 %v4008_v10  ;;  %v4091_v10 = vld [vmem:[#allocation2 + $0x194] ss:$8 sps:$4 sm:$0xff]  }
  0x5e   : > { %940 = vmatprep.subr.bf16.mxu0 %v4301_v0 }
  0x61   : > { %941 = vmatpush2.bf16.msra.mxu0 %v4009_v11 }
  0x62   : > { %942 = vmatprep.subr.bf16.mxu0 %v4301_v0 }
  0x65   : > { %943 = vmatpush2.bf16.msra.mxu0 %v4010_v12 }
  0x66   : > { %944 = vmatprep.subr.bf16.mxu0 %v4301_v0 }
  0x69   : > { %945 = vmatpush2.bf16.msra.mxu0 %v4011_v13 }
  0x6a   : > { %946 = vmatprep.subr.bf16.mxu0 %v4301_v0 }
  0x6d   : > { %947 = vmatpush2.bf16.msra.mxu0 %v4012_v14  ;;  %v4093_v14 = vld [vmem:[#allocation2 + $0x190] ss:$8 sps:$4 sm:$0xff]  }
  0x6e   : > { %948 = vmatprep.subr.bf16.mxu0 %v4301_v0 }
  0x71   : > { %949 = vmatpush2.bf16.msra.mxu0 %v4013_v15  ;;  %v4094_v15 = vld [vmem:[#allocation2 + $0x1a4] ss:$8 sps:$4 sm:$0xff]  }
  0x72   : > { %950 = vmatprep.subr.bf16.mxu0 %v4301_v0 }
  0x75   : > { %951 = vmatpush2.bf16.msra.mxu0 %v4014_v16 }
  0x76   : > { %952 = vmatprep.subr.bf16.mxu0 %v4301_v0  ;;  %v4076_v0 = vld [vmem:[#allocation2 + $0x144] ss:$8 sps:$4 sm:$0xff]  }
  0x79   : > { %953 = vmatpush2.bf16.msra.mxu0 %v4015_v17 }
  0x7c   : > { %955 = vmatmul.mubr.bf16.vlgmr.msra.gmra.mxu0 %v4016_v18 }
  0x7d   : > { %962 = vmatprep.mubr.bf16.mxu0 %v4019_v19 }
  0x84   : > { %963 = vmatmul.mubr.bf16.gmra.mxu0 %v4021_v20  ;;  %v4096_v20 = vld [vmem:[#allocation2 + $0x1a0] ss:$8 sps:$4 sm:$0xff]  }
  0x85   : > { %970 = vmatprep.mubr.bf16.mxu0 %v4022_v21  ;;  %v4097_v21 = vld [vmem:[#allocation2 + $0x1b4] ss:$8 sps:$4 sm:$0xff]  }
  0x8c   : > { %971 = vmatmul.mubr.bf16.gmra.mxu0 %v4024_v22 }
  0x8d   : > { %978 = vmatprep.mubr.bf16.mxu0 %v4025_v23 }
  0x94   : > { %979 = vmatmul.mubr.bf16.gmra.mxu0 %v4027_v24 }
  0x95   : > { %986 = vmatprep.mubr.bf16.mxu0 %v4028_v25 }
  0x9c   : > { %987 = vmatmul.mubr.bf16.gmra.mxu0 %v4030_v26  ;;  %v4099_v26 = vld [vmem:[#allocation2 + $0x1b0] ss:$8 sps:$4 sm:$0xff]  }
  0x9d   : > { %994 = vmatprep.mubr.bf16.mxu0 %v4031_v27  ;;  %v4102_v27 = vld [vmem:[#allocation2 + $0x1c4] ss:$8 sps:$4 sm:$0xff]  }
  0xa4   : > { %995 = vmatmul.mubr.bf16.gmra.mxu0 %v4033_v28 }
  0xa5   : > { %1002 = vmatprep.mubr.bf16.mxu0 %v4034_v29 }
  0xac   : > { %1003 = vmatmul.mubr.bf16.gmra.mxu0 %v4036_v30 }
  0xad   : > { %1010 = vmatprep.mubr.bf16.mxu0 %v4037_v31 }
  0xb4   : > { %1011 = vmatmul.mubr.bf16.gmra.mxu0 %v4039_v32  ;;  %v4100_v32 = vld [vmem:[#allocation2 + $0x1c0] ss:$8 sps:$4 sm:$0xff]  }
  0xb5   : > { %1018 = vmatprep.mubr.bf16.mxu0 %v4040_v33  ;;  %v4105_v33 = vld [vmem:[#allocation2 + $0x1d4] ss:$8 sps:$4 sm:$0xff]  }
  0xbc   : > { %1019 = vmatmul.mubr.bf16.gmra.mxu0 %v4042_v34 }
  0xbd   : > { %1026 = vmatprep.mubr.bf16.mxu0 %v4043_v35 }
  0xc4   : > { %1027 = vmatmul.mubr.bf16.gmra.mxu0 %v4045_v36 }
  0xc5   : > { %1034 = vmatprep.mubr.bf16.mxu0 %v4046_v37 }
  0xcc   : > { %1035 = vmatmul.mubr.bf16.gmra.mxu0 %v4048_v38  ;;  %v4103_v38 = vld [vmem:[#allocation2 + $0x1d0] ss:$8 sps:$4 sm:$0xff]  }
  0xcd   : > { %1042 = vmatprep.mubr.bf16.mxu0 %v4049_v39 }
  0xd4   : > { %1043 = vmatmul.mubr.bf16.gmra.mxu0 %v4051_v40  ;;  %v4108_v40 = vld [vmem:[#allocation2 + $0x1e4] ss:$8 sps:$4 sm:$0xff]  }
  0xd5   : > { %1050 = vmatprep.mubr.bf16.mxu0 %v4052_v41 }
  0xdc   : > { %1051 = vmatmul.mubr.bf16.gmra.mxu0 %v4054_v42 }
  0xdd   : > { %1058 = vmatprep.mubr.bf16.mxu0 %v4055_v43 }
  0xe4   : > { %1059 = vmatmul.mubr.bf16.gmra.mxu0 %v4057_v44  ;;  %v1448_v44 = vld [vmem:[#allocation5 + $0x4] sm:$0x3] }
  0xe5   : > { %1066 = vmatprep.mubr.bf16.mxu0 %v4058_v45  ;;  %v1462_v50 = vand.u32 %v1448_v44, %v4470_v49 }
  0xec   : > { %1067 = vmatmul.mubr.bf16.gmra.mxu0 %v4060_v51 }
  0xed   : > { %1074 = vmatprep.mubr.bf16.mxu0 %v4061_v52 }
  0xf4   : > { %1075 = vmatmul.mubr.bf16.gmra.mxu0 %v4063_v53 }
  0xf5   : > { %1082 = vmatprep.mubr.bf16.mxu0 %v4064_v54 }
  0xfc   : > { %1083 = vmatmul.mubr.bf16.gmra.mxu0 %v4066_v55  ;;  %v4109_v55 = vld [vmem:[#allocation2 + $0x1f0] ss:$8 sps:$4 sm:$0xff]  }
  0xfd   : > { %1090 = vmatprep.mubr.bf16.mxu0 %v4067_v56 }
 0x104   : > { %1091 = vmatmul.mubr.bf16.gmra.mxu0 %v4069_v59 }
 0x105   : > { %1098 = vmatprep.mubr.bf16.mxu0 %v4070_v60 }
 0x10c   : > { %1099 = vmatmul.mubr.bf16.gmra.mxu0 %v4072_v61 }
 0x10d   : > { %1106 = vmatprep.mubr.bf16.mxu0 %v4073_v62 }
 0x114   : > { %1107 = vmatmul.mubr.bf16.gmra.mxu0 %v4075_v63  ;;  %v4112_v63 = vld [vmem:[#allocation2 + $0x200] ss:$8 sps:$4 sm:$0xff]  }
 0x115   : > { %1114 = vmatprep.mubr.bf16.mxu0 %v4076_v0 }
 0x11c   : > { %1115 = vmatmul.mubr.bf16.gmra.mxu0 %v4078_v1  ;;  %v4117_v1 = vld [vmem:[#allocation2 + $0x214] ss:$8 sps:$4 sm:$0xff]  }
 0x11d   : > { %1122 = vmatprep.mubr.bf16.mxu0 %v4079_v2 }
 0x124   : > { %1123 = vmatmul.mubr.bf16.gmra.mxu0 %v4081_v3 }
 0x125   : > { %1130 = vmatprep.mubr.bf16.mxu0 %v4082_v4 }
 0x12c   : > { %1131 = vmatmul.mubr.bf16.gmra.mxu0 %v4084_v5  ;;  %v1538_v5 = vld [vmem:[#allocation5 + $0x6] sm:$0x3] }
 0x12d   : > { %1138 = vmatprep.mubr.bf16.mxu0 %v4085_v6 }
 0x134   : > { %1139 = vmatmul.mubr.bf16.gmra.mxu0 %v4087_v7  ;;  %v4115_v7 = vld [vmem:[#allocation2 + $0x210] ss:$8 sps:$4 sm:$0xff]  }
 0x135   : > { %1146 = vmatprep.mubr.bf16.mxu0 %v4088_v8 }
 0x13c   : > { %v4477_v11 = vpop.f32.mrf.mxu0  ;;  %1147 = vmatmul.mubr.bf16.gmra.mxu0 %v4090_v9  ;;  %v4120_v9 = vld [vmem:[#allocation2 + $0x224] ss:$8 sps:$4 sm:$0xff]  }
 0x13d   : > { %1154 = vmatprep.mubr.bf16.mxu0 %v4091_v10 }
 0x13e   : > { %v958_v12 = vpop.f32.mrf.mxu0 }
 0x13f   : > { %v1552_v12 = vand.u32 %v1538_v5, %v4470_v49 }
 0x140   : > { %v4479_v13 = vpop.f32.mrf.mxu0 }
 0x142   : > { %v961_v16 = vpop.f32.mrf.mxu0 }
 0x143   : > { %v4118_v16 = vld [vmem:[#allocation2 + $0x220] ss:$8 sps:$4 sm:$0xff]  }
 0x144   : > { %v4481_v17 = vpop.f32.mrf.mxu0  ;;  %1155 = vmatmul.mubr.bf16.gmra.mxu0 %v4093_v14 }
 0x145   : > { %1162 = vmatprep.mubr.bf16.mxu0 %v4094_v15 }
 0x146   : > { %v966_v18 = vpop.f32.mrf.mxu0 }
 0x147   : > { %v4123_v18 = vld [vmem:[#allocation2 + $0x234] ss:$8 sps:$4 sm:$0xff]  }
 0x148   : > { %v4483_v19 = vpop.f32.mrf.mxu0 }
 0x149   : > { %v1244_v8 = vpack.c.bf16 %v4483_v19, %v4481_v17 }
 0x14a   : > { %v969_v22 = vpop.f32.mrf.mxu0 }
 0x14c   : > { %v4485_v23 = vpop.f32.mrf.mxu0  ;;  %1163 = vmatmul.mubr.bf16.gmra.mxu0 %v4096_v20 }
 0x14d   : > { %1170 = vmatprep.mubr.bf16.mxu0 %v4097_v21 }
 0x14e   : > { %v974_v24 = vpop.f32.mrf.mxu0 }
 0x150   : > { %v4487_v25 = vpop.f32.mrf.mxu0 }
 0x151   : > { %v1245_v10 = vpack.c.bf16 %v4487_v25, %v4485_v23  ;;  %v1628_v23 = vld [vmem:[#allocation5 + $0x8] sm:$0x3]  ;;  %v4121_v25 = vld [vmem:[#allocation2 + $0x230] ss:$8 sps:$4 sm:$0xff]  }
 0x152   : > { %v977_v28 = vpop.f32.mrf.mxu0 }
 0x154   : > { %v4489_v29 = vpop.f32.mrf.mxu0  ;;  %1171 = vmatmul.mubr.bf16.gmra.mxu0 %v4099_v26 }
 0x155   : > { %1178 = vmatprep.mubr.bf16.mxu0 %v4102_v27 }
 0x156   : > { %v982_v30 = vpop.f32.mrf.mxu0 }
 0x157   : > { %v1642_v30 = vand.u32 %v1628_v23, %v4470_v49  ;;  %v1898_v23 = vld [vmem:[#allocation5 + $0xe] sm:$0x3] }
 0x158   : > { %v4491_v31 = vpop.f32.mrf.mxu0 }
 0x159   : > { %v1246_v17 = vpack.c.bf16 %v4491_v31, %v4489_v29 }
 0x15a   : > { %v985_v34 = vpop.f32.mrf.mxu0 }
 0x15c   : > { %v988_v35 = vpop.f32.mrf.mxu0  ;;  %1179 = vmatmul.mubr.bf16.gmra.mxu0 %v4100_v32 }
 0x15d   : > { %1186 = vmatprep.mubr.bf16.mxu0 %v4105_v33 }
 0x15e   : > { %v990_v36 = vpop.f32.mrf.mxu0 }
 0x160   : > { %v991_v37 = vpop.f32.mrf.mxu0 }
 0x161   : > { %v1247_v39 = vpack.c.bf16 %v991_v37, %v988_v35 }
 0x162   : > { %v993_v41 = vpop.f32.mrf.mxu0 }
 0x163   : > { %3676 = vmatprep.mubr.msk.bf16.mxu1 %vm1282_vm2, %v1247_v39 }
 0x164   : > { %v996_v42 = vpop.f32.mrf.mxu0  ;;  %1187 = vmatmul.mubr.bf16.gmra.mxu0 %v4103_v38 }
 0x165   : > { %1194 = vmatprep.mubr.bf16.mxu0 %v4108_v40 }
 0x166   : > { %v998_v43 = vpop.f32.mrf.mxu0 }
 0x168   : > { %v999_v45 = vpop.f32.mrf.mxu0 }
 0x169   : > { %v1248_v47 = vpack.c.bf16 %v999_v45, %v996_v42  ;;  %v1718_v42 = vld [vmem:[#allocation5 + $0xa] sm:$0x3] }
 0x16a   : > { %v1001_v51 = vpop.f32.mrf.mxu0  ;;  %v1732_v45 = vand.u32 %v1718_v42, %v4470_v49 }
 0x16b   : > { %3677 = vmatmul.mubr.msk.bf16.vlgmr.msra.gmra.mxu1 %vm1282_vm2, %v1248_v47 }
 0x16c   : > { %v1004_v52 = vpop.f32.mrf.mxu0  ;;  %1195 = vmatmul.mubr.bf16.gmra.mxu0 %v4106_v46  ;;  %3685 = vmatpush3.bf16.msra.mxu1 %v4474_v58  ;;  %v1243_v58 = vpack.c.bf16 %v4479_v13, %v4477_v11 }
 0x16d   : > { %1202 = vmatprep.mubr.bf16.mxu0 %v4111_v48  ;;  %3694 = vmatprep.subr.bf16.mxu1 %v1462_v50 }
 0x16e   : > { %v1006_v53 = vpop.f32.mrf.mxu0 }
 0x170   : > { %v1007_v54 = vpop.f32.mrf.mxu0 }
 0x171   : > { %v1249_v56 = vpack.c.bf16 %v1007_v54, %v1004_v52 }
 0x172   : > { %v1009_v59 = vpop.f32.mrf.mxu0 }
 0x173   : > { %3680 = vmatprep.mubr.msk.bf16.mxu1 %vm1282_vm2, %v1249_v56 }
 0x174   : > { %v1012_v60 = vpop.f32.mrf.mxu0  ;;  %1203 = vmatmul.mubr.bf16.gmra.mxu0 %v4109_v55 }
 0x175   : > { %1210 = vmatprep.mubr.bf16.mxu0 %v4114_v57 }
 0x176   : > { %v1014_v61 = vpop.f32.mrf.mxu0 }
 0x178   : > { %v1015_v62 = vpop.f32.mrf.mxu0 }
 0x179   : > { %v1250_v0 = vpack.c.bf16 %v1015_v62, %v1012_v60 }
 0x17a   : > { %v1017_v2 = vpop.f32.mrf.mxu0 }
 0x17b   : > { %3681 = vmatmul.mubr.msk.bf16.gmra.mxu1 %vm1282_vm2, %v1250_v0 }
 0x17c   : > { %v1020_v3 = vpop.f32.mrf.mxu0  ;;  %1211 = vmatmul.mubr.bf16.gmra.mxu0 %v4112_v63  ;;  %3686 = vmatprep.mubr.msk.bf16.mxu1 %vm1282_vm2, %v1243_v58  ;;  %v1808_v58 = vld [vmem:[#allocation5 + $0xc] sm:$0x3] }
 0x17d   : > { %1218 = vmatprep.mubr.bf16.mxu0 %v4117_v1 }
 0x17e   : > { %v1022_v4 = vpop.f32.mrf.mxu0 }
 0x17f   : > { %v1822_v4 = vand.u32 %v1808_v58, %v4470_v49 }
 0x180   : > { %v1023_v6 = vpop.f32.mrf.mxu0 }
 0x181   : > { %v1251_v19 = vpack.c.bf16 %v1023_v6, %v1020_v3 }
 0x182   : > { %v1025_v11 = vpop.f32.mrf.mxu0 }
 0x183   : > { %3687 = vmatmul.mubr.msk.bf16.vlgmr.msra.gmra.mxu1 %vm1282_vm2, %v1244_v8 }
 0x184   : > { %v1028_v13 = vpop.f32.mrf.mxu0  ;;  %1219 = vmatmul.mubr.bf16.gmra.mxu0 %v4115_v7  ;;  %3690 = vmatprep.mubr.msk.bf16.mxu1 %vm1282_vm2, %v1245_v10 }
 0x185   : > { %1226 = vmatprep.mubr.bf16.mxu0 %v4120_v9  ;;  %3695 = vmatpush3.bf16.msra.mxu1 %v1462_v50 }
 0x186   : > { %v1030_v14 = vpop.f32.mrf.mxu0  ;;  %3704 = vmatprep.subr.bf16.mxu1 %v1552_v12 }
 0x188   : > { %v1031_v15 = vpop.f32.mrf.mxu0 }
 0x189   : > { %v1252_v26 = vpack.c.bf16 %v1031_v15, %v1028_v13 }
 0x18a   : > { %v1033_v20 = vpop.f32.mrf.mxu0 }
 0x18b   : > { %3691 = vmatmul.mubr.msk.bf16.gmra.mxu1 %vm1282_vm2, %v1246_v17 }
 0x18c   : > { %v1036_v21 = vpop.f32.mrf.mxu0  ;;  %1227 = vmatmul.mubr.bf16.gmra.mxu0 %v4118_v16  ;;  %3696 = vmatprep.mubr.msk.bf16.mxu1 %vm1282_vm2, %v1251_v19 }
 0x18d   : > { %1234 = vmatprep.mubr.bf16.mxu0 %v4123_v18 }
 0x18e   : > { %v1038_v22 = vpop.f32.mrf.mxu0 }
 0x190   : > { %v1039_v24 = vpop.f32.mrf.mxu0 }
 0x191   : > { %v1253_v27 = vpack.c.bf16 %v1039_v24, %v1036_v21 }
 0x192   : > { %v1041_v28 = vpop.f32.mrf.mxu0 }
 0x193   : > { %3697 = vmatmul.mubr.msk.bf16.vlgmr.msra.gmra.mxu1 %vm1282_vm2, %v1252_v26  ;;  %v1912_v26 = vand.u32 %v1898_v23, %v4470_v49 }
 0x194   : > { %v1044_v29 = vpop.f32.mrf.mxu0  ;;  %1235 = vmatmul.mubr.bf16.gmra.mxu0 %v4121_v25  ;;  %3700 = vmatprep.mubr.msk.bf16.mxu1 %vm1282_vm2, %v1253_v27 }
 0x195   : > { %3705 = vmatpush3.bf16.msra.mxu1 %v1552_v12 }
 0x196   : > { %v1046_v31 = vpop.f32.mrf.mxu0  ;;  %3714 = vmatprep.subr.bf16.mxu1 %v1642_v30 }
 0x198   : > { %v1047_v32 = vpop.f32.mrf.mxu0 }
 0x199   : > { %v1254_v33 = vpack.c.bf16 %v1047_v32, %v1044_v29 }
 0x19a   : > { %v1049_v34 = vpop.f32.mrf.mxu0 }
 0x19b   : > { %3701 = vmatmul.mubr.msk.bf16.gmra.mxu1 %vm1282_vm2, %v1254_v33 }
 0x19c   : > { %v1052_v35 = vpop.f32.mrf.mxu0 }
 0x19e   : > { %v1054_v36 = vpop.f32.mrf.mxu0 }
 0x1a0   : > { %v1055_v37 = vpop.f32.mrf.mxu0 }
 0x1a1   : > { %v1255_v38 = vpack.c.bf16 %v1055_v37, %v1052_v35 }
 0x1a2   : > { %v1057_v39 = vpop.f32.mrf.mxu0 }
 0x1a3   : > { %3706 = vmatprep.mubr.msk.bf16.mxu1 %vm1282_vm2, %v1255_v38 }
 0x1a4   : > { %v1060_v40 = vpop.f32.mrf.mxu0 }
 0x1a6   : > { %v1062_v41 = vpop.f32.mrf.mxu0 }
 0x1a8   : > { %v1063_v43 = vpop.f32.mrf.mxu0 }
 0x1a9   : > { %v1256_v44 = vpack.c.bf16 %v1063_v43, %v1060_v40 }
 0x1aa   : > { %v1065_v46 = vpop.f32.mrf.mxu0 }
 0x1ab   : > { %3707 = vmatmul.mubr.msk.bf16.vlgmr.msra.gmra.mxu1 %vm1282_vm2, %v1256_v44 }
 0x1ac   : > { %v1068_v47 = vpop.f32.mrf.mxu0  ;;  %3715 = vmatpush3.bf16.msra.mxu1 %v1642_v30 }
 0x1ad   : > { %3724 = vmatprep.subr.bf16.mxu1 %v1732_v45 }
 0x1ae   : > { %v1070_v48 = vpop.f32.mrf.mxu0 }
 0x1b0   : > { %v1071_v50 = vpop.f32.mrf.mxu0 }
 0x1b1   : > { %v1257_v51 = vpack.c.bf16 %v1071_v50, %v1068_v47 }
 0x1b2   : > { %v1073_v52 = vpop.f32.mrf.mxu0 }
 0x1b3   : > { %3710 = vmatprep.mubr.msk.bf16.mxu1 %vm1282_vm2, %v1257_v51 }
 0x1b4   : > { %v1076_v53 = vpop.f32.mrf.mxu0 }
 0x1b6   : > { %v1078_v54 = vpop.f32.mrf.mxu0 }
 0x1b8   : > { %v1079_v55 = vpop.f32.mrf.mxu0 }
 0x1b9   : > { %v1258_v56 = vpack.c.bf16 %v1079_v55, %v1076_v53 }
 0x1ba   : > { %v1081_v57 = vpop.f32.mrf.mxu0 }
 0x1bb   : > { %3711 = vmatmul.mubr.msk.bf16.gmra.mxu1 %vm1282_vm2, %v1258_v56 }
 0x1bc   : > { %v1084_v59 = vpop.f32.mrf.mxu0 }
 0x1be   : > { %v1086_v60 = vpop.f32.mrf.mxu0 }
 0x1c0   : > { %v1087_v61 = vpop.f32.mrf.mxu0 }
 0x1c1   : > { %v1259_v62 = vpack.c.bf16 %v1087_v61, %v1084_v59 }
 0x1c2   : > { %v1089_v63 = vpop.f32.mrf.mxu0 }
 0x1c3   : > { %3716 = vmatprep.mubr.msk.bf16.mxu1 %vm1282_vm2, %v1259_v62 }
 0x1c4   : > { %v1092_v0 = vpop.f32.mrf.mxu0 }
 0x1c6   : > { %v1094_v1 = vpop.f32.mrf.mxu0 }
 0x1c8   : > { %v1095_v2 = vpop.f32.mrf.mxu0 }
 0x1c9   : > { %v1260_v3 = vpack.c.bf16 %v1095_v2, %v1092_v0 }
 0x1ca   : > { %v1097_v5 = vpop.f32.mrf.mxu0 }
 0x1cb   : > { %3717 = vmatmul.mubr.msk.bf16.vlgmr.msra.gmra.mxu1 %vm1282_vm2, %v1260_v3 }
 0x1cc   : > { %v1100_v6 = vpop.f32.mrf.mxu0  ;;  %3725 = vmatpush3.bf16.msra.mxu1 %v1732_v45  ;;  %v1988_v45 = vld [vmem:[#allocation5 + $0x10] sm:$0x3] }
 0x1cd   : > { %3734 = vmatprep.subr.bf16.mxu1 %v1822_v4  ;;  %v2002_v48 = vand.u32 %v1988_v45, %v4470_v49 }
 0x1ce   : > { %v1102_v7 = vpop.f32.mrf.mxu0 }
 0x1d0   : > { %v1103_v8 = vpop.f32.mrf.mxu0 }
 0x1d1   : > { %v1261_v9 = vpack.c.bf16 %v1103_v8, %v1100_v6 }
 0x1d2   : > { %v1105_v10 = vpop.f32.mrf.mxu0 }
 0x1d3   : > { %3720 = vmatprep.mubr.msk.bf16.mxu1 %vm1282_vm2, %v1261_v9 }
 0x1d4   : > { %v1108_v11 = vpop.f32.mrf.mxu0 }
 0x1d6   : > { %v1110_v12 = vpop.f32.mrf.mxu0 }
 0x1d8   : > { %v1111_v13 = vpop.f32.mrf.mxu0 }
 0x1d9   : > { %v1262_v14 = vpack.c.bf16 %v1111_v13, %v1108_v11 }
 0x1da   : > { %v1113_v15 = vpop.f32.mrf.mxu0 }
 0x1db   : > { %3721 = vmatmul.mubr.msk.bf16.gmra.mxu1 %vm1282_vm2, %v1262_v14 }
 0x1dc   : > { %v1116_v16 = vpop.f32.mrf.mxu0 }
 0x1de   : > { %v1118_v17 = vpop.f32.mrf.mxu0 }
 0x1e0   : > { %v1119_v18 = vpop.f32.mrf.mxu0 }
 0x1e1   : > { %v1263_v19 = vpack.c.bf16 %v1119_v18, %v1116_v16 }
 0x1e2   : > { %v1121_v20 = vpop.f32.mrf.mxu0 }
 0x1e3   : > { %3726 = vmatprep.mubr.msk.bf16.mxu1 %vm1282_vm2, %v1263_v19 }
 0x1e4   : > { %v1124_v21 = vpop.f32.mrf.mxu0 }
 0x1e6   : > { %v1126_v22 = vpop.f32.mrf.mxu0 }
 0x1e8   : > { %v1127_v24 = vpop.f32.mrf.mxu0 }
 0x1e9   : > { %v1264_v25 = vpack.c.bf16 %v1127_v24, %v1124_v21 }
 0x1ea   : > { %v1129_v27 = vpop.f32.mrf.mxu0 }
 0x1eb   : > { %3727 = vmatmul.mubr.msk.bf16.vlgmr.msra.gmra.mxu1 %vm1282_vm2, %v1264_v25 }
 0x1ec   : > { %v1132_v28 = vpop.f32.mrf.mxu0  ;;  %3735 = vmatpush3.bf16.msra.mxu1 %v1822_v4 }
 0x1ed   : > { %3744 = vmatprep.subr.bf16.mxu1 %v1912_v26 }
 0x1ee   : > { %v1134_v30 = vpop.f32.mrf.mxu0 }
 0x1f0   : > { %v1135_v29 = vpop.f32.mrf.mxu0 }
 0x1f1   : > { %v1265_v31 = vpack.c.bf16 %v1135_v29, %v1132_v28 }
 0x1f2   : > { %v1137_v32 = vpop.f32.mrf.mxu0 }
 0x1f3   : > { %3730 = vmatprep.mubr.msk.bf16.mxu1 %vm1282_vm2, %v1265_v31 }
 0x1f4   : > { %v1140_v33 = vpop.f32.mrf.mxu0 }
 0x1f6   : > { %v1142_v34 = vpop.f32.mrf.mxu0 }
 0x1f8   : > { %v1143_v35 = vpop.f32.mrf.mxu0 }
 0x1f9   : > { %v1266_v36 = vpack.c.bf16 %v1143_v35, %v1140_v33 }
 0x1fa   : > { %v1145_v37 = vpop.f32.mrf.mxu0 }
 0x1fb   : > { %3731 = vmatmul.mubr.msk.bf16.gmra.mxu1 %vm1282_vm2, %v1266_v36 }
 0x1fc   : > { %v1148_v38 = vpop.f32.mrf.mxu0 }
 0x1fe   : > { %v1150_v39 = vpop.f32.mrf.mxu0 }
 0x200   : > { %v1151_v40 = vpop.f32.mrf.mxu0 }
 0x201   : > { %v1267_v41 = vpack.c.bf16 %v1151_v40, %v1148_v38 }
 0x202   : > { %v1153_v42 = vpop.f32.mrf.mxu0 }
 0x203   : > { %3736 = vmatprep.mubr.msk.bf16.mxu1 %vm1282_vm2, %v1267_v41 }
 0x204   : > { %v1156_v43 = vpop.f32.mrf.mxu0 }
 0x206   : > { %v1158_v44 = vpop.f32.mrf.mxu0 }
 0x208   : > { %v1159_v46 = vpop.f32.mrf.mxu0 }
 0x209   : > { %v1268_v47 = vpack.c.bf16 %v1159_v46, %v1156_v43 }
 0x20a   : > { %v1161_v50 = vpop.f32.mrf.mxu0 }
 0x20b   : > { %3737 = vmatmul.mubr.msk.bf16.vlgmr.msra.gmra.mxu1 %vm1282_vm2, %v1268_v47 }
 0x20c   : > { %v1164_v51 = vpop.f32.mrf.mxu0  ;;  %3745 = vmatpush3.bf16.msra.mxu1 %v1912_v26 }
 0x20d   : > { %3754 = vmatprep.subr.bf16.mxu1 %v2002_v48 }
 0x20e   : > { %v1166_v52 = vpop.f32.mrf.mxu0 }
 0x210   : > { %v1167_v53 = vpop.f32.mrf.mxu0 }
 0x211   : > { %v1269_v54 = vpack.c.bf16 %v1167_v53, %v1164_v51 }
 0x212   : > { %v1169_v55 = vpop.f32.mrf.mxu0 }
 0x213   : > { %3740 = vmatprep.mubr.msk.bf16.mxu1 %vm1282_vm2, %v1269_v54 }
 0x214   : > { %v1172_v56 = vpop.f32.mrf.mxu0 }
 0x216   : > { %v1174_v57 = vpop.f32.mrf.mxu0 }
 0x218   : > { %v1175_v59 = vpop.f32.mrf.mxu0 }
 0x219   : > { %v1270_v60 = vpack.c.bf16 %v1175_v59, %v1172_v56 }
 0x21a   : > { %v1177_v61 = vpop.f32.mrf.mxu0 }
 0x21b   : > { %3741 = vmatmul.mubr.msk.bf16.gmra.mxu1 %vm1282_vm2, %v1270_v60 }
 0x21c   : > { %v1180_v49 = vpop.f32.mrf.mxu0 }
 0x21e   : > { %v1182_v62 = vpop.f32.mrf.mxu0 }
 0x220   : > { %v1183_v63 = vpop.f32.mrf.mxu0 }
 0x221   : > { %v1271_v0 = vpack.c.bf16 %v1183_v63, %v1180_v49 }
 0x222   : > { %v1185_v1 = vpop.f32.mrf.mxu0 }
 0x223   : > { %3746 = vmatprep.mubr.msk.bf16.mxu1 %vm1282_vm2, %v1271_v0 }
 0x224   : > { %v1188_v58 = vpop.f32.mrf.mxu0 }
 0x226   : > { %v1190_v2 = vpop.f32.mrf.mxu0 }
 0x228   : > { %v1191_v3 = vpop.f32.mrf.mxu0 }
 0x229   : > { %v1272_v4 = vpack.c.bf16 %v1191_v3, %v1188_v58 }
 0x22a   : > { %v1193_v5 = vpop.f32.mrf.mxu0 }
 0x22b   : > { %3747 = vmatmul.mubr.msk.bf16.vlgmr.msra.gmra.mxu1 %vm1282_vm2, %v1272_v4  ;;  %v3678_v7 = vpop.f32.mrf.mxu1 }
 0x22c   : > { %v1196_v6 = vpop.f32.mrf.mxu0  ;;  %3755 = vmatpush3.bf16.msra.mxu1 %v2002_v48 }
 0x22d   : > { %v1336_v10 = vpop.f32.mrf.mxu1 }
 0x22e   : > { %v1198_v8 = vpop.f32.mrf.mxu0 }
 0x22f   : > { %v3679_v14 = vpop.f32.mrf.mxu1 }
 0x230   : > { %v1199_v9 = vpop.f32.mrf.mxu0 }
 0x231   : > { %v1273_v11 = vpack.c.bf16 %v1199_v9, %v1196_v6  ;;  %v4540_v17 = vpop.f32.mrf.mxu1 }
 0x232   : > { %v1201_v12 = vpop.f32.mrf.mxu0 }
 0x233   : > { %3750 = vmatprep.mubr.msk.bf16.mxu1 %vm1282_vm2, %v1273_v11 }
 0x234   : > { %v1204_v13 = vpop.f32.mrf.mxu0 }
 0x236   : > { %v1206_v15 = vpop.f32.mrf.mxu0 }
 0x238   : > { %v1207_v16 = vpop.f32.mrf.mxu0 }
 0x239   : > { %v1274_v18 = vpack.c.bf16 %v1207_v16, %v1204_v13 }
 0x23a   : > { %v1209_v19 = vpop.f32.mrf.mxu0 }
 0x23b   : > { %v3682_v20 = vpop.f32.mrf.mxu1  ;;  %3751 = vmatmul.mubr.msk.bf16.gmra.mxu1 %vm1282_vm2, %v1274_v18 }
 0x23c   : > { %v1212_v21 = vpop.f32.mrf.mxu0 }
 0x23d   : > { %v1352_v22 = vpop.f32.mrf.mxu1 }
 0x23e   : > { %v1214_v23 = vpop.f32.mrf.mxu0 }
 0x23f   : > { %v3683_v24 = vpop.f32.mrf.mxu1 }
 0x240   : > { %v1215_v25 = vpop.f32.mrf.mxu0 }
 0x241   : > { %v1275_v26 = vpack.c.bf16 %v1215_v25, %v1212_v21  ;;  %v4543_v27 = vpop.f32.mrf.mxu1 }
 0x242   : > { %v1217_v28 = vpop.f32.mrf.mxu0 }
 0x243   : > { %v3688_v30 = vpop.f32.mrf.mxu1  ;;  %3756 = vmatprep.mubr.msk.bf16.mxu1 %vm1282_vm2, %v1275_v26 }
 0x244   : > { %v1425_v29 = vadd.f32 %v3688_v30, %v3678_v7  ;;  %v1220_v31 = vpop.f32.mrf.mxu0 }
 0x245   : > { %v1416_v32 = vpop.f32.mrf.mxu1 }
 0x246   : > { %v1417_v33 = vadd.f32 %v1416_v32, %v1336_v10  ;;  %v1222_v34 = vpop.f32.mrf.mxu0 }
 0x247   : > { %v3689_v35 = vpop.f32.mrf.mxu1  ;;  %v4303_v34 = vmov 0.0  }
 0x248   : > { %v1428_v36 = vadd.f32 %v3689_v35, %v3679_v14  ;;  %v1223_v37 = vpop.f32.mrf.mxu0  ;;  %3764 = vmatprep.subr.bf16.mxu1 %v4303_v34 }
 0x249   : > { %v1276_v38 = vpack.c.bf16 %v1223_v37, %v1220_v31  ;;  %v4546_v39 = vpop.f32.mrf.mxu1 }
 0x24a   : > { %v1225_v40 = vpop.f32.mrf.mxu0 }
 0x24b   : > { %v3692_v41 = vpop.f32.mrf.mxu1  ;;  %3757 = vmatmul.mubr.msk.bf16.vlgmr.msra.gmra.mxu1 %vm1282_vm2, %v1276_v38 }
 0x24c   : > { %v1441_v42 = vadd.f32 %v3692_v41, %v3682_v20  ;;  %v1228_v43 = vpop.f32.mrf.mxu0 }
 0x24d   : > { %v1432_v44 = vpop.f32.mrf.mxu1 }
 0x24e   : > { %v1433_v45 = vadd.f32 %v1432_v44, %v1352_v22  ;;  %v1230_v46 = vpop.f32.mrf.mxu0 }
 0x24f   : > { %v3693_v47 = vpop.f32.mrf.mxu1 }
 0x250   : > { %v1444_v48 = vadd.f32 %v3693_v47, %v3683_v24  ;;  %v1231_v50 = vpop.f32.mrf.mxu0 }
 0x251   : > { %v1277_v51 = vpack.c.bf16 %v1231_v50, %v1228_v43  ;;  %v4549_v52 = vpop.f32.mrf.mxu1 }
 0x252   : > { %v1233_v53 = vpop.f32.mrf.mxu0 }
 0x253   : > { %v3698_v54 = vpop.f32.mrf.mxu1  ;;  %3760 = vmatprep.mubr.msk.bf16.mxu1 %vm1282_vm2, %v1277_v51 }
 0x254   : > { %v1531_v55 = vadd.f32 %v3698_v54, %v1425_v29  ;;  %v1236_v56 = vpop.f32.mrf.mxu0 }
 0x255   : > { %v1498_v57 = vpop.f32.mrf.mxu1 }
 0x256   : > { %v1529_v59 = vadd.f32 %v1498_v57, %v1417_v33  ;;  %v1238_v60 = vpop.f32.mrf.mxu0 }
 0x257   : > { %v3699_v61 = vpop.f32.mrf.mxu1 }
 0x258   : > { %v1532_v49 = vadd.f32 %v3699_v61, %v1428_v36  ;;  %v1239_v62 = vpop.f32.mrf.mxu0 }
 0x259   : > { %v1278_v63 = vpack.c.bf16 %v1239_v62, %v1236_v56  ;;  %v4552_v0 = vpop.f32.mrf.mxu1 }
 0x25a   : > { %v1241_v1 = vpop.f32.mrf.mxu0 }
 0x25b   : > { %v3702_v58 = vpop.f32.mrf.mxu1  ;;  %3761 = vmatmul.mubr.msk.bf16.gmra.mxu1 %vm1282_vm2, %v1278_v63 }
 0x25c   : > { %v1535_v2 = vadd.f32 %v3702_v58, %v1441_v42  ;;  %3772 = vmatprep.mubr.msk.bf16.mxu1 %vm4304_vm3, %v4303_v34 }
 0x25d   : > { %v1514_v3 = vpop.f32.mrf.mxu1 }
 0x25e   : > { %v1533_v4 = vadd.f32 %v1514_v3, %v1433_v45 }
 0x25f   : > { %v3703_v5 = vpop.f32.mrf.mxu1 }
 0x260   : > { %v1536_v6 = vadd.f32 %v3703_v5, %v1444_v48 }
 0x261   : > { %v4555_v7 = vpop.f32.mrf.mxu1 }
 0x26b   : > { %v3708_v8 = vpop.f32.mrf.mxu1 }
 0x26c   : > { %v1621_v9 = vadd.f32 %v3708_v8, %v1531_v55  ;;  %v3422_v8 = vld [vmem:[%s4954_s3] ss:$0 sm:$0xff] }
 0x26d   : > { %v1588_v10 = vpop.f32.mrf.mxu1 }
 0x26e   : > { %v1619_v11 = vadd.f32 %v1588_v10, %v1529_v59 }
 0x26f   : > { %v3709_v12 = vpop.f32.mrf.mxu1 }
 0x270   : > { %v1622_v13 = vadd.f32 %v3709_v12, %v1532_v49 }
 0x271   : > { %v4557_v14 = vpop.f32.mrf.mxu1 }
 0x27b   : > { %v3712_v15 = vpop.f32.mrf.mxu1 }
 0x27c   : > { %v1625_v16 = vadd.f32 %v3712_v15, %v1535_v2 }
 0x27d   : > { %v1604_v18 = vpop.f32.mrf.mxu1 }
 0x27e   : > { %v4559_v19 = vadd.f32 %v1604_v18, %v1533_v4  ;;  %v1436_v18 = vadd.f32 %v4549_v52, %v4543_v27 }
 0x27f   : > { %v3713_v20 = vpop.f32.mrf.mxu1 }
 0x280   : > { %v4561_v21 = vadd.f32 %v3713_v20, %v1536_v6 }
 0x281   : > { %v4563_v22 = vpop.f32.mrf.mxu1 }
 0x28b   : > { %v3718_v23 = vpop.f32.mrf.mxu1 }
 0x28c   : > { %v1711_v24 = vadd.f32 %v3718_v23, %v1621_v9 }
 0x28d   : > { %v1678_v25 = vpop.f32.mrf.mxu1 }
 0x28e   : > { %v1709_v26 = vadd.f32 %v1678_v25, %v1619_v11  ;;  %v1534_v25 = vadd.f32 %v4555_v7, %v1436_v18  ;;  %v4129_v18 = vld [vmem:[%s4955_s4 + $0x28] sm:$0xff]  }
 0x28f   : > { %v3719_v28 = vpop.f32.mrf.mxu1 }
 0x290   : > { %v1712_v30 = vadd.f32 %v3719_v28, %v1622_v13 }
 0x291   : > { %v4565_v29 = vpop.f32.mrf.mxu1 }
 0x29b   : > { %v3722_v31 = vpop.f32.mrf.mxu1 }
 0x29c   : > { %v1715_v20 = vadd.f32 %v3722_v31, %v1625_v16 }
 0x29d   : > { %v1694_v32 = vpop.f32.mrf.mxu1 }
 0x29f   : > { %v3723_v33 = vpop.f32.mrf.mxu1 }
 0x2a1   : > { %v1697_v35 = vpop.f32.mrf.mxu1 }
 0x2ab   : > { %v3728_v36 = vpop.f32.mrf.mxu1 }
 0x2ac   : > { %v1801_v63 = vadd.f32 %v3728_v36, %v1711_v24  ;;  %v1624_v36 = vadd.f32 %v4563_v22, %v1534_v25  ;;  %v4134_v25 = vld [vmem:[%s4956_s5 + $0x30] sm:$0xff]  }
 0x2ad   : > { %v1768_v37 = vpop.f32.mrf.mxu1 }
 0x2ae   : > { %v4568_v38 = vadd.f32 %v1768_v37, %v1709_v26  ;;  %v1713_v37 = vadd.f32 %v1694_v32, %v4559_v19  ;;  %v1714_v52 = vadd.f32 %v1697_v35, %v1624_v36 }
 0x2af   : > { %v3729_v40 = vpop.f32.mrf.mxu1 }
 0x2b0   : > { %v1802_v2 = vadd.f32 %v3729_v40, %v1712_v30  ;;  %v1420_v30 = vadd.f32 %v4546_v39, %v4540_v17  ;;  %v1716_v40 = vadd.f32 %v3723_v33, %v4561_v21 }
 0x2b1   : > { %v4572_v41 = vpop.f32.mrf.mxu1 }
 0x2bb   : > { %v3732_v42 = vpop.f32.mrf.mxu1 }
 0x2bc   : > { %v1805_v26 = vadd.f32 %v3732_v42, %v1715_v20  ;;  %v4130_v20 = vld [vmem:[%s4955_s4 + $0x30] sm:$0xff]  }
 0x2bd   : > { %v1784_v43 = vpop.f32.mrf.mxu1 }
 0x2be   : > { %v1803_v16 = vadd.f32 %v1784_v43, %v1713_v37 }
 0x2bf   : > { %v3733_v44 = vpop.f32.mrf.mxu1 }
 0x2c0   : > { %v1806_v31 = vadd.f32 %v3733_v44, %v1716_v40 }
 0x2c1   : > { %v1787_v45 = vpop.f32.mrf.mxu1 }
 0x2cb   : > { %v3738_v46 = vpop.f32.mrf.mxu1 }
 0x2cc   : > { %v1891_v1 = vadd.f32 %v3738_v46, %v1801_v63 }
 0x2cd   : > { %v4574_v47 = vpop.f32.mrf.mxu1 }
 0x2cf   : > { %v3739_v48 = vpop.f32.mrf.mxu1 }
 0x2d0   : > { %v1892_v5 = vadd.f32 %v3739_v48, %v1802_v2  ;;  %v1530_v48 = vadd.f32 %v4552_v0, %v1420_v30 }
 0x2d1   : > { %v1861_v50 = vpop.f32.mrf.mxu1 }
 0x2d2   : > { %v1620_v7 = vadd.f32 %v4557_v14, %v1530_v48 }
 0x2d4   : > { %v1710_v22 = vadd.f32 %v4565_v29, %v1620_v7 }
 0x2d6   : > { %v1800_v0 = vadd.f32 %v4572_v41, %v1710_v22 }
 0x2db   : > { %v3742_v51 = vpop.f32.mrf.mxu1 }
 0x2dc   : > { %v1895_v46 = vadd.f32 %v3742_v51, %v1805_v26  ;;  %v4135_v26 = vld [vmem:[%s4956_s5 + $0x28] sm:$0xff]  }
 0x2dd   : > { %v1874_v53 = vpop.f32.mrf.mxu1 }
 0x2de   : > { %v1893_v63 = vadd.f32 %v1874_v53, %v1803_v16  ;;  %v1889_v53 = vadd.f32 %v4574_v47, %v4568_v38 }
 0x2df   : > { %v3743_v54 = vpop.f32.mrf.mxu1 }
 0x2e0   : > { %v1896_v17 = vadd.f32 %v3743_v54, %v1806_v31 }
 0x2e1   : > { %v1877_v55 = vpop.f32.mrf.mxu1 }
 0x2eb   : > { %v3748_v56 = vpop.f32.mrf.mxu1 }
 0x2ec   : > { %v1981_v3 = vadd.f32 %v3748_v56, %v1891_v1  ;;  %v1890_v1 = vadd.f32 %v1861_v50, %v1800_v0 }
 0x2ed   : > { %v4576_v57 = vpop.f32.mrf.mxu1 }
 0x2ef   : > { %v3749_v59 = vpop.f32.mrf.mxu1 }
 0x2f0   : > { %v1982_v10 = vadd.f32 %v3749_v59, %v1892_v5  ;;  %v1804_v59 = vadd.f32 %v1787_v45, %v1714_v52  ;;  %v4137_v52 = vld [vmem:[%s4956_s5 + $0x18] sm:$0xff]  }
 0x2f1   : > { %v1951_v60 = vpop.f32.mrf.mxu1 }
 0x2f2   : > { %v1894_v32 = vadd.f32 %v1877_v55, %v1804_v59  ;;  %v1980_v54 = vadd.f32 %v1951_v60, %v1890_v1  ;;  %v4124_v60 = vld [vmem:[%s4955_s4] sm:$0xff]   ;;  %v4139_v59 = vld [vmem:[%s4956_s5 + $0x8] sm:$0xff]  }
 0x2fb   : > { %v3752_v61 = vpop.f32.mrf.mxu1 }
 0x2fc   : > { %v1985_v56 = vadd.f32 %v3752_v61, %v1895_v46 }
 0x2fd   : > { %v1964_v49 = vpop.f32.mrf.mxu1 }
 0x2fe   : > { %v1983_v21 = vadd.f32 %v1964_v49, %v1893_v63 }
 0x2ff   : > { %v3753_v62 = vpop.f32.mrf.mxu1 }
 0x300   : > { %v1986_v33 = vadd.f32 %v3753_v62, %v1896_v17  ;;  %v1979_v62 = vadd.f32 %v4576_v57, %v1889_v53  ;;  %v4145_v53 = vld [vmem:[%s4956_s5 + $0x78] sm:$0xff]  }
 0x301   : > { %v1967_v58 = vpop.f32.mrf.mxu1 }
 0x302   : > { %v1984_v35 = vadd.f32 %v1967_v58, %v1894_v32  ;;  %v4141_v32 = vld [vmem:[%s4956_s5 + $0x58] sm:$0xff]  }
 0x30b   : > { %v3758_v4 = vpop.f32.mrf.mxu1 }
 0x30c   : > { %v2071_v6 = vadd.f32 %v3758_v4, %v1981_v3 }
 0x30d   : > { %v2038_v9 = vpop.f32.mrf.mxu1 }
 0x30e   : > { %v2086_v12 = vadd.f32 %v3422_v8, %v2071_v6  ;;  %v2069_v5 = vadd.f32 %v2038_v9, %v1979_v62  ;;  %v4133_v9 = vld [vmem:[%s4956_s5 + $0x38] sm:$0xff]  }
 0x30f   : > { %v3759_v11 = vpop.f32.mrf.mxu1 }
 0x310   : > { %v2072_v13 = vadd.f32 %v3759_v11, %v1982_v10  ;;  %v2094_v23 = vmax.f32 %v2086_v12, 0.0  ;;  %v2084_v11 = vadd.f32 %v3422_v8, %v2069_v5  ;;  %v4126_v12 = vld [vmem:[%s4955_s4 + $0x10] sm:$0xff]   ;;  %v4148_v5 = vld [vmem:[%s4956_s5 + $0x60] sm:$0xff]  }
 0x311   : > { %v2041_v27 = vpop.f32.mrf.mxu1 }
 0x312   : > { %v2087_v15 = vadd.f32 %v3422_v8, %v2072_v13  ;;  %v2070_v41 = vadd.f32 %v2041_v27, %v1980_v54  ;;  %v2092_v47 = vmax.f32 %v2084_v11, 0.0  ;;  %v4127_v13 = vld [vmem:[%s4955_s4 + $0x18] sm:$0xff]  }
 0x314   : > { %v2095_v24 = vmax.f32 %v2087_v15, 0.0  ;;  %v2085_v50 = vadd.f32 %v3422_v8, %v2070_v41  ;;  %v4128_v15 = vld [vmem:[%s4955_s4 + $0x20] sm:$0xff]   ;;  %v4147_v41 = vld [vmem:[%s4956_s5 + $0x68] sm:$0xff]  }
 0x316   : > { %v2101_v28 = vpack.c.bf16 %v2095_v24, %v2094_v23  ;;  %v2093_v38 = vmax.f32 %v2085_v50, 0.0  ;;  %v4131_v23 = vld [vmem:[%s4955_s4 + $0x38] sm:$0xff]   ;;  %v4132_v24 = vld [vmem:[%s4955_s4 + $0x40] sm:$0xff]  }
 0x318   : > { %v2100_v57 = vpack.c.bf16 %v2093_v38, %v2092_v47 }
 0x31b   : > { %v3762_v42 = vpop.f32.mrf.mxu1 }
 0x31c   : > { %v2075_v39 = vadd.f32 %v3762_v42, %v1985_v56  ;;  %v4138_v56 = vld [vmem:[%s4956_s5 + $0x10] sm:$0xff]  }
 0x31d   : > { %v2054_v19 = vpop.f32.mrf.mxu1 }
 0x31e   : > { %v2090_v43 = vadd.f32 %v3422_v8, %v2075_v39  ;;  %v2073_v44 = vadd.f32 %v2054_v19, %v1983_v21  ;;  %v4140_v39 = vld [vmem:[%s4956_s5] sm:$0xff]  }
 0x31f   : > { %v3763_v51 = vpop.f32.mrf.mxu1 }
 0x320   : > { %v2076_v61 = vadd.f32 %v3763_v51, %v1986_v33  ;;  %v2098_v29 = vmax.f32 %v2090_v43, 0.0  ;;  %v2088_v3 = vadd.f32 %v3422_v8, %v2073_v44  ;;  %v4142_v51 = vld [vmem:[%s4956_s5 + $0x50] sm:$0xff]   ;;  %v4143_v44 = vld [vmem:[%s4956_s5 + $0x48] sm:$0xff]  }
 0x321   : > { %v2057_v14 = vpop.f32.mrf.mxu1 }
 0x322   : > { %v2091_v2 = vadd.f32 %v3422_v8, %v2076_v61  ;;  %v2074_v45 = vadd.f32 %v2057_v14, %v1984_v35  ;;  %v2096_v6 = vmax.f32 %v2088_v3, 0.0  ;;  %v4144_v14 = vld [vmem:[%s4956_s5 + $0x40] sm:$0xff]  }
 0x324   : > { %v2099_v55 = vmax.f32 %v2091_v2, 0.0  ;;  %v2089_v49 = vadd.f32 %v3422_v8, %v2074_v45  ;;  %v4125_v8 = vld [vmem:[%s4955_s4 + $0x8] sm:$0xff]  }
 0x326   : > { %v2103_v4 = vpack.c.bf16 %v2099_v55, %v2098_v29  ;;  %v2097_v58 = vmax.f32 %v2089_v49, 0.0  ;;  %v4146_v55 = vld [vmem:[%s4956_s5 + $0x70] sm:$0xff]  }
 0x328   : > { %3765 = vmatpush3.bf16.msra.mxu1 %v2103_v4  ;;  %v2102_v10 = vpack.c.bf16 %v2097_v58, %v2096_v6 }
 0x329   : > { %3766 = vmatprep.subr.bf16.mxu1 %v4303_v34 }
 0x32c   : > { %3767 = vmatpush3.bf16.msra.mxu1 %v2102_v10  ;;  %v4149_v10 = vld [vmem:[%s4956_s5 + $0x98] sm:$0xff]  }
 0x32d   : > { %3768 = vmatprep.subr.bf16.mxu1 %v4303_v34 }
 0x330   : > { %3769 = vmatpush3.bf16.msra.mxu1 %v2101_v28  ;;  %v4136_v28 = vld [vmem:[%s4956_s5 + $0x20] sm:$0xff]  }
 0x331   : > { %3770 = vmatprep.subr.bf16.mxu1 %v4303_v34 }
 0x334   : > { %3771 = vmatpush3.bf16.msra.mxu1 %v2100_v57 }
 0x335   : > { %3808 = vmatprep.subr.bf16.mxu1 %v4303_v34 }
 0x337   : > { %3773 = vmatmul.mubr.msk.bf16.vlgmr.msra.gmra.mxu1 %vm2167_vm4, %v4124_v60  ;;  %v4150_v60 = vld [vmem:[%s4956_s5 + $0x90] sm:$0xff]  }
 0x338   : > { %3776 = vmatprep.mubr.msk.bf16.mxu1 %vm4304_vm3, %v4303_v34  ;;  %3809 = vmatpush3.bf16.msra.mxu1 %v4133_v9 }
 0x339   : > { %3810 = vmatprep.subr.bf16.mxu1 %v4303_v34 }
 0x33c   : > { %3811 = vmatpush3.bf16.msra.mxu1 %v4134_v25  ;;  %v4154_v25 = vld [vmem:[%s4956_s5 + $0xb0] sm:$0xff]  }
 0x33d   : > { %3812 = vmatprep.subr.bf16.mxu1 %v4303_v34 }
 0x33f   : > { %3777 = vmatmul.mubr.msk.bf16.gmra.mxu1 %vm2167_vm4, %v4125_v8 }
 0x340   : > { %3780 = vmatprep.mubr.msk.bf16.mxu1 %vm4304_vm3, %v4303_v34  ;;  %3813 = vmatpush3.bf16.msra.mxu1 %v4135_v26  ;;  %v4155_v26 = vld [vmem:[%s4956_s5 + $0xa8] sm:$0xff]  }
 0x341   : > { %3814 = vmatprep.subr.bf16.mxu1 %v4303_v34 }
 0x344   : > { %3815 = vmatpush3.bf16.msra.mxu1 %v4136_v28  ;;  %v4156_v28 = vld [vmem:[%s4956_s5 + $0xa0] sm:$0xff]  }
 0x345   : > { %3820 = vmatprep.subr.bf16.mxu1 %v4303_v34 }
 0x347   : > { %3781 = vmatmul.mubr.msk.bf16.gmra.mxu1 %vm2167_vm4, %v4126_v12  ;;  %v4151_v12 = vld [vmem:[%s4956_s5 + $0x88] sm:$0xff]  }
 0x348   : > { %3784 = vmatprep.mubr.msk.bf16.mxu1 %vm4304_vm3, %v4303_v34 }
 0x34f   : > { %3785 = vmatmul.mubr.msk.bf16.gmra.mxu1 %vm2167_vm4, %v4127_v13 }
 0x350   : > { %3788 = vmatprep.mubr.msk.bf16.mxu1 %vm4304_vm3, %v4303_v34 }
 0x357   : > { %3789 = vmatmul.mubr.msk.bf16.gmra.mxu1 %vm2167_vm4, %v4128_v15 }
 0x358   : > { %3792 = vmatprep.mubr.msk.bf16.mxu1 %vm4304_vm3, %v4303_v34 }
 0x35f   : > { %3793 = vmatmul.mubr.msk.bf16.gmra.mxu1 %vm2167_vm4, %v4129_v18 }
 0x360   : > { %3796 = vmatprep.mubr.msk.bf16.mxu1 %vm4304_vm3, %v4303_v34 }
 0x367   : > { %3797 = vmatmul.mubr.msk.bf16.gmra.mxu1 %vm2167_vm4, %v4130_v20  ;;  %v4152_v20 = vld [vmem:[%s4956_s5 + $0x80] sm:$0xff]  }
 0x368   : > { %3800 = vmatprep.mubr.msk.bf16.mxu1 %vm4304_vm3, %v4303_v34 }
 0x36f   : > { %3801 = vmatmul.mubr.msk.bf16.gmra.mxu1 %vm2167_vm4, %v4131_v23  ;;  %v4153_v23 = vld [vmem:[%s4956_s5 + $0xb8] sm:$0xff]  }
 0x370   : > { %3804 = vmatprep.mubr.msk.bf16.mxu1 %vm4304_vm3, %v4303_v34 }
 0x377   : > { %3805 = vmatmul.mubr.msk.bf16.gmra.mxu1 %vm2167_vm4, %v4132_v24 }
 0x378   : > { %3816 = vmatprep.mubr.msk.bf16.mxu1 %vm4304_vm3, %v4303_v34 }
 0x3f7   : > { %v2229_v30 = vpop.f32.mrf.mxu1 }
 0x3f9   : > { %v3774_v36 = vpop.f32.mrf.mxu1 }
 0x3fb   : > { %v2232_v37 = vpop.f32.mrf.mxu1 }
 0x3fc   : > { %v2300_v33 = vpack.c.bf16 %v2232_v37, %v2229_v30  ;;  %v4157_v30 = vld [vmem:[%s4956_s5 + $0xd8] sm:$0xff]   ;;  %v4158_v37 = vld [vmem:[%s4956_s5 + $0xd0] sm:$0xff]  }
 0x3fd   : > { %v3775_v40 = vpop.f32.mrf.mxu1 }
 0x3fe   : > { %v4159_v40 = vld [vmem:[%s4956_s5 + $0xc8] sm:$0xff]  }
 0x3ff   : > { %v2237_v46 = vpop.f32.mrf.mxu1 }
 0x401   : > { %v3778_v48 = vpop.f32.mrf.mxu1 }
 0x402   : > { %v4161_v48 = vld [vmem:[%s4956_s5 + $0xf8] sm:$0xff]  }
 0x403   : > { %v2240_v27 = vpop.f32.mrf.mxu1 }
 0x404   : > { %v2301_v16 = vpack.c.bf16 %v2240_v27, %v2237_v46  ;;  %v4160_v46 = vld [vmem:[%s4956_s5 + $0xc0] sm:$0xff]  }
 0x405   : > { %v3779_v31 = vpop.f32.mrf.mxu1 }
 0x406   : > { %3817 = vmatmul.mubr.msk.bf16.vlgmr.msra.gmra.mxu1 %vm2167_vm4, %v2301_v16  ;;  %v4163_v16 = vld [vmem:[%s4956_s5 + $0xe8] sm:$0xff]   ;;  %v4164_v31 = vld [vmem:[%s4956_s5 + $0xe0] sm:$0xff]  }
 0x407   : > { %3821 = vmatpush3.bf16.msra.mxu1 %v4137_v52  ;;  %3828 = vmatprep.mubr.msk.bf16.mxu1 %vm4304_vm3, %v4303_v34  ;;  %v2245_v7 = vpop.f32.mrf.mxu1  ;;  %v4162_v52 = vld [vmem:[%s4956_s5 + $0xf0] sm:$0xff]  }
 0x408   : > { %3822 = vmatprep.subr.bf16.mxu1 %v4303_v34 }
 0x409   : > { %v3782_v42 = vpop.f32.mrf.mxu1 }
 0x40a   : > { %v4167_v42 = vld [vmem:[%s4956_s5 + $0x108] sm:$0xff]  }
 0x40b   : > { %3823 = vmatpush3.bf16.msra.mxu1 %v4138_v56  ;;  %v2248_v63 = vpop.f32.mrf.mxu1  ;;  %v4165_v56 = vld [vmem:[%s4956_s5 + $0x118] sm:$0xff]  }
 0x40c   : > { %3824 = vmatprep.subr.bf16.mxu1 %v4303_v34  ;;  %v2302_v29 = vpack.c.bf16 %v2248_v63, %v2245_v7  ;;  %v4166_v7 = vld [vmem:[%s4956_s5 + $0x110] sm:$0xff]  }
 0x40d   : > { %v3783_v17 = vpop.f32.mrf.mxu1 }
 0x40f   : > { %3825 = vmatpush3.bf16.msra.mxu1 %v4139_v59  ;;  %v2253_v22 = vpop.f32.mrf.mxu1  ;;  %v4168_v59 = vld [vmem:[%s4956_s5 + $0x100] sm:$0xff]  }
 0x410   : > { %3826 = vmatprep.subr.bf16.mxu1 %v4303_v34 }
 0x411   : > { %v3786_v19 = vpop.f32.mrf.mxu1 }
 0x412   : > { %v4169_v19 = vld [vmem:[%s4958_s7] sm:$0xff]  }
 0x413   : > { %3827 = vmatpush3.bf16.msra.mxu1 %v4140_v39  ;;  %v2256_v21 = vpop.f32.mrf.mxu1  ;;  %3918 = vmatprep.mubr.msk.bf16.mxu0 %vm3103_vm5, %v4169_v19  ;;  %v4171_v19 = vld [vmem:[%s4958_s7 + $0x8] sm:$0xff]  }
 0x414   : > { %3832 = vmatprep.subr.bf16.mxu1 %v4303_v34  ;;  %v2303_v38 = vpack.c.bf16 %v2256_v21, %v2253_v22 }
 0x415   : > { %v3787_v0 = vpop.f32.mrf.mxu1 }
 0x416   : > { %3829 = vmatmul.mubr.msk.bf16.vlgmr.msra.gmra.mxu1 %vm2167_vm4, %v2300_v33  ;;  %v3037_v33 = vld [vmem:[%s4959_s8 + $0x10] sm:$0xff]  ;;  %v3035_v0 = vld [vmem:[%s4959_s8] sm:$0xff] }
 0x417   : > { %3833 = vmatpush3.bf16.msra.mxu1 %v4141_v32  ;;  %3840 = vmatprep.mubr.msk.bf16.mxu1 %vm4304_vm3, %v4303_v34  ;;  %v4698_v35 = vpop.f32.mrf.mxu1  ;;  %v4170_v32 = vld [vmem:[%s4958_s7 + $0x10] sm:$0xff]  }
 0x418   : > { %3834 = vmatprep.subr.bf16.mxu1 %v4303_v34  ;;  %3055 = vperm.xlu1 %3999, %v3037_v33  }
 0x419   : > { %v3790_v43 = vpop.f32.mrf.mxu1  ;;  %3045 = vperm.xlu0 %3998, %v3035_v0  }
 0x41a   : > { %v3036_v43 = vld [vmem:[%s4959_s8 + $0x8] sm:$0xff] }
 0x41b   : > { %3835 = vmatpush3.bf16.msra.mxu1 %v4142_v51  ;;  %v2264_v61 = vpop.f32.mrf.mxu1 }
 0x41c   : > { %3836 = vmatprep.subr.bf16.mxu1 %v4303_v34  ;;  %v2304_v24 = vpack.c.bf16 %v2264_v61, %v4698_v35  ;;  %v3038_v35 = vld [vmem:[%s4959_s8 + $0x18] sm:$0xff] }
 0x41d   : > { %v3791_v1 = vpop.f32.mrf.mxu1  ;;  %3060 = vperm.xlu1 %3999, %v3038_v35   ;;  %3050 = vperm.xlu0 %3998, %v3036_v43  }
 0x41f   : > { %3837 = vmatpush3.bf16.msra.mxu1 %v4143_v44  ;;  %v4708_v2 = vpop.f32.mrf.mxu1 }
 0x420   : > { %3838 = vmatprep.subr.bf16.mxu1 %v4303_v34 }
 0x421   : > { %v3794_v45 = vpop.f32.mrf.mxu1 }
 0x422   : > { %v3042_v45 = vld [vmem:[%s4959_s8 + $0x38] sm:$0xff] }
 0x423   : > { %3839 = vmatpush3.bf16.msra.mxu1 %v4144_v14  ;;  %v4714_v54 = vpop.f32.mrf.mxu1  ;;  %v3040_v14 = vld [vmem:[%s4959_s8 + $0x28] sm:$0xff] }
 0x424   : > { %3844 = vmatprep.subr.bf16.mxu1 %v4303_v34  ;;  %v2305_v36 = vpack.c.bf16 %v4714_v54, %v4708_v2  ;;  %v3039_v2 = vld [vmem:[%s4959_s8 + $0x20] sm:$0xff]  ;;  %3070 = vperm.xlu1 %3999, %v3040_v14  }
 0x425   : > { %v3795_v3 = vpop.f32.mrf.mxu1  ;;  %3065 = vperm.xlu0 %3998, %v3039_v2  }
 0x426   : > { %3841 = vmatmul.mubr.msk.bf16.vlgmr.msra.gmra.mxu1 %vm2167_vm4, %v2302_v29 }
 0x427   : > { %3845 = vmatpush3.bf16.msra.mxu1 %v4145_v53  ;;  %3852 = vmatprep.mubr.msk.bf16.mxu1 %vm4304_vm3, %v4303_v34  ;;  %v4723_v49 = vpop.f32.mrf.mxu1  ;;  %v3041_v53 = vld [vmem:[%s4959_s8 + $0x30] sm:$0xff] }
 0x428   : > { %3846 = vmatprep.subr.bf16.mxu1 %v4303_v34  ;;  %3080 = vperm.xlu1 %3999, %v3042_v45  }
 0x429   : > { %v3798_v62 = vpop.f32.mrf.mxu1  ;;  %3075 = vperm.xlu0 %3998, %v3041_v53  }
 0x42b   : > { %3847 = vmatpush3.bf16.msra.mxu1 %v4146_v55  ;;  %v4729_v4 = vpop.f32.mrf.mxu1 }
 0x42c   : > { %3848 = vmatprep.subr.bf16.mxu1 %v4303_v34  ;;  %v2306_v27 = vpack.c.bf16 %v4729_v4, %v4723_v49 }
 0x42d   : > { %v3799_v58 = vpop.f32.mrf.mxu1 }
 0x42f   : > { %3849 = vmatpush3.bf16.msra.mxu1 %v4147_v41  ;;  %v4735_v6 = vpop.f32.mrf.mxu1 }
 0x430   : > { %3850 = vmatprep.subr.bf16.mxu1 %v4303_v34 }
 0x431   : > { %v3802_v50 = vpop.f32.mrf.mxu1 }
 0x433   : > { %3851 = vmatpush3.bf16.msra.mxu1 %v4148_v5  ;;  %v4741_v11 = vpop.f32.mrf.mxu1 }
 0x434   : > { %3856 = vmatprep.subr.bf16.mxu1 %v4303_v34  ;;  %v2307_v47 = vpack.c.bf16 %v4741_v11, %v4735_v6 }
 0x435   : > { %v3803_v57 = vpop.f32.mrf.mxu1 }
 0x436   : > { %3853 = vmatmul.mubr.msk.bf16.vlgmr.msra.gmra.mxu1 %vm2167_vm4, %v2303_v38 }
 0x437   : > { %3857 = vmatpush3.bf16.msra.mxu1 %v4149_v10  ;;  %3864 = vmatprep.mubr.msk.bf16.mxu1 %vm4304_vm3, %v4303_v34  ;;  %v4752_v9 = vpop.f32.mrf.mxu1 }
 0x438   : > { %3858 = vmatprep.subr.bf16.mxu1 %v4303_v34 }
 0x439   : > { %v3806_v8 = vpop.f32.mrf.mxu1 }
 0x43b   : > { %3859 = vmatpush3.bf16.msra.mxu1 %v4150_v60  ;;  %v4758_v13 = vpop.f32.mrf.mxu1 }
 0x43c   : > { %3860 = vmatprep.subr.bf16.mxu1 %v4303_v34  ;;  %v2308_v15 = vpack.c.bf16 %v4758_v13, %v4752_v9 }
 0x43d   : > { %v3807_v18 = vpop.f32.mrf.mxu1 }
 0x43f   : > { %3861 = vmatpush3.bf16.msra.mxu1 %v4151_v12 }
 0x440   : > { %3862 = vmatprep.subr.bf16.mxu1 %v4303_v34 }
 0x443   : > { %3863 = vmatpush3.bf16.msra.mxu1 %v4152_v20 }
 0x444   : > { %3868 = vmatprep.subr.bf16.mxu1 %v4303_v34 }
 0x446   : > { %3865 = vmatmul.mubr.msk.bf16.vlgmr.msra.gmra.mxu1 %vm2167_vm4, %v2304_v24 }
 0x447   : > { %3869 = vmatpush3.bf16.msra.mxu1 %v4153_v23  ;;  %3876 = vmatprep.mubr.msk.bf16.mxu1 %vm4304_vm3, %v4303_v34 }
 0x448   : > { %3870 = vmatprep.subr.bf16.mxu1 %v4303_v34 }
 0x44b   : > { %3871 = vmatpush3.bf16.msra.mxu1 %v4154_v25 }
 0x44c   : > { %3872 = vmatprep.subr.bf16.mxu1 %v4303_v34 }
 0x44f   : > { %3873 = vmatpush3.bf16.msra.mxu1 %v4155_v26 }
 0x450   : > { %3874 = vmatprep.subr.bf16.mxu1 %v4303_v34 }
 0x453   : > { %3875 = vmatpush3.bf16.msra.mxu1 %v4156_v28 }
 0x454   : > { %3880 = vmatprep.subr.bf16.mxu1 %v4303_v34 }
 0x456   : > { %3877 = vmatmul.mubr.msk.bf16.vlgmr.msra.gmra.mxu1 %vm2167_vm4, %v2305_v36 }
 0x457   : > { %3881 = vmatpush3.bf16.msra.mxu1 %v4157_v30  ;;  %3888 = vmatprep.mubr.msk.bf16.mxu1 %vm4304_vm3, %v4303_v34 }
 0x458   : > { %3882 = vmatprep.subr.bf16.mxu1 %v4303_v34 }
 0x45b   : > { %3883 = vmatpush3.bf16.msra.mxu1 %v4158_v37 }
 0x45c   : > { %3884 = vmatprep.subr.bf16.mxu1 %v4303_v34 }
 0x45f   : > { %3885 = vmatpush3.bf16.msra.mxu1 %v4159_v40 }
 0x460   : > { %3886 = vmatprep.subr.bf16.mxu1 %v4303_v34 }
 0x463   : > { %3887 = vmatpush3.bf16.msra.mxu1 %v4160_v46 }
 0x464   : > { %3892 = vmatprep.subr.bf16.mxu1 %v4303_v34 }
 0x466   : > { %3889 = vmatmul.mubr.msk.bf16.vlgmr.msra.gmra.mxu1 %vm2167_vm4, %v2306_v27 }
 0x467   : > { %3893 = vmatpush3.bf16.msra.mxu1 %v4161_v48  ;;  %3900 = vmatprep.mubr.msk.bf16.mxu1 %vm4304_vm3, %v4303_v34 }
 0x468   : > { %3894 = vmatprep.subr.bf16.mxu1 %v4303_v34 }
 0x46b   : > { %3895 = vmatpush3.bf16.msra.mxu1 %v4162_v52  ;;  %v3550_v52 = vld [vmem:[%s4957_s6] ss:$0 sm:$0xff] }
 0x46c   : > { %3896 = vmatprep.subr.bf16.mxu1 %v4303_v34 }
 0x46f   : > { %3897 = vmatpush3.bf16.msra.mxu1 %v4163_v16 }
 0x470   : > { %3898 = vmatprep.subr.bf16.mxu1 %v4303_v34 }
 0x473   : > { %3899 = vmatpush3.bf16.msra.mxu1 %v4164_v31 }
 0x474   : > { %3904 = vmatprep.subr.bf16.mxu1 %v4303_v34 }
 0x476   : > { %3901 = vmatmul.mubr.msk.bf16.vlgmr.msra.gmra.mxu1 %vm2167_vm4, %v2307_v47 }
 0x477   : > { %3905 = vmatpush3.bf16.msra.mxu1 %v4165_v56  ;;  %3912 = vmatprep.mubr.msk.bf16.mxu1 %vm4304_vm3, %v4303_v34 }
 0x478   : > { %3906 = vmatprep.subr.bf16.mxu1 %v4303_v34 }
 0x47b   : > { %3907 = vmatpush3.bf16.msra.mxu1 %v4166_v7 }
 0x47c   : > { %3908 = vmatprep.subr.bf16.mxu1 %v4303_v34 }
 0x47f   : > { %3909 = vmatpush3.bf16.msra.mxu1 %v4167_v42 }
 0x480   : > { %3910 = vmatprep.subr.bf16.mxu1 %v4303_v34 }
 0x483   : > { %3911 = vmatpush3.bf16.msra.mxu1 %v4168_v59 }
 0x486   : > { %3913 = vmatmul.mubr.msk.bf16.vlgmr.msra.gmra.mxu1 %vm2167_vm4, %v2308_v15 }
 0x487   : > { %3922 = vmatprep.mubr.msk.bf16.mxu1 %vm3103_vm5, %v4170_v32  ;;  %v4172_v32 = vld [vmem:[%s4958_s7 + $0x18] sm:$0xff]  }
 0x4c6   : > { %v2387_v63 = vpop.f32.mrf.mxu1 }
 0x4c8   : > { %v3818_v17 = vpop.f32.mrf.mxu1 }
 0x4ca   : > { %v2390_v39 = vpop.f32.mrf.mxu1 }
 0x4cc   : > { %v3819_v22 = vpop.f32.mrf.mxu1 }
 0x4d6   : > { %v2455_v34 = vpop.f32.mrf.mxu1 }
 0x4d7   : > { %v2456_v21 = vadd.f32 %v2455_v34, %v2387_v63  ;;  %v3046_v34 = vpop.permute.xlu0 %3045 }
 0x4d8   : > { %v3830_v51 = vpop.f32.mrf.mxu1 }
 0x4da   : > { %v2458_v44 = vpop.f32.mrf.mxu1 }
 0x4db   : > { %v2459_v61 = vadd.f32 %v2458_v44, %v2390_v39  ;;  %v3051_v33 = vpop.permute.xlu0 %3050 }
 0x4dc   : > { %v3831_v1 = vpop.f32.mrf.mxu1 }
 0x4df   : > { %v3066_v51 = vpop.permute.xlu0 %3065 }
 0x4e3   : > { %v3076_v43 = vpop.permute.xlu0 %3075 }
 0x4e6   : > { %v2532_v54 = vpop.f32.mrf.mxu1 }
 0x4e7   : > { %v2539_v29 = vadd.f32 %v2532_v54, %v2456_v21  ;;  %v3056_v21 = vpop.permute.xlu1 %3055 }
 0x4e8   : > { %v3842_v3 = vpop.f32.mrf.mxu1 }
 0x4ea   : > { %v2535_v55 = vpop.f32.mrf.mxu1 }
 0x4eb   : > { %v2540_v49 = vadd.f32 %v2535_v55, %v2459_v61  ;;  %v3061_v0 = vpop.permute.xlu1 %3060 }
 0x4ec   : > { %v3843_v62 = vpop.f32.mrf.mxu1 }
 0x4ef   : > { %v3071_v35 = vpop.permute.xlu1 %3070 }
 0x4f6   : > { %v2611_v41 = vpop.f32.mrf.mxu1 }
 0x4f7   : > { %v2618_v4 = vadd.f32 %v2611_v41, %v2539_v29  ;;  %v3081_v29 = vpop.permute.xlu1 %3080 }
 0x4f8   : > { %v3854_v58 = vpop.f32.mrf.mxu1 }
 0x4fa   : > { %v2614_v5 = vpop.f32.mrf.mxu1 }
 0x4fb   : > { %v2619_v6 = vadd.f32 %v2614_v5, %v2540_v49 }
 0x4fc   : > { %v3855_v50 = vpop.f32.mrf.mxu1 }
 0x506   : > { %v2690_v10 = vpop.f32.mrf.mxu1 }
 0x507   : > { %v2697_v26 = vadd.f32 %v2690_v10, %v2618_v4 }
 0x508   : > { %v3866_v11 = vpop.f32.mrf.mxu1 }
 0x50a   : > { %v2693_v38 = vpop.f32.mrf.mxu1 }
 0x50b   : > { %v2698_v30 = vadd.f32 %v2693_v38, %v2619_v6 }
 0x50c   : > { %v3867_v47 = vpop.f32.mrf.mxu1 }
 0x516   : > { %v2769_v57 = vpop.f32.mrf.mxu1 }
 0x517   : > { %v2776_v28 = vadd.f32 %v2769_v57, %v2697_v26 }
 0x518   : > { %v3878_v60 = vpop.f32.mrf.mxu1 }
 0x51a   : > { %v2772_v9 = vpop.f32.mrf.mxu1 }
 0x51b   : > { %v2777_v37 = vadd.f32 %v2772_v9, %v2698_v30 }
 0x51c   : > { %v3879_v8 = vpop.f32.mrf.mxu1 }
 0x526   : > { %v2848_v12 = vpop.f32.mrf.mxu1 }
 0x527   : > { %v2855_v36 = vadd.f32 %v2848_v12, %v2776_v28 }
 0x528   : > { %v3890_v13 = vpop.f32.mrf.mxu1 }
 0x52a   : > { %v2851_v15 = vpop.f32.mrf.mxu1 }
 0x52b   : > { %v2856_v48 = vadd.f32 %v2851_v15, %v2777_v37 }
 0x52c   : > { %v3891_v18 = vpop.f32.mrf.mxu1 }
 0x536   : > { %v2927_v20 = vpop.f32.mrf.mxu1 }
 0x537   : > { %v2934_v40 = vadd.f32 %v2927_v20, %v2855_v36 }
 0x538   : > { %v3902_v23 = vpop.f32.mrf.mxu1 }
 0x53a   : > { %v2930_v24 = vpop.f32.mrf.mxu1 }
 0x53b   : > { %v2935_v31 = vadd.f32 %v2930_v24, %v2856_v48 }
 0x53c   : > { %v3903_v25 = vpop.f32.mrf.mxu1 }
 0x546   : > { %v3006_v46 = vpop.f32.mrf.mxu1 }
 0x547   : > { %v3013_v27 = vadd.f32 %v3006_v46, %v2934_v40 }
 0x548   : > { %v3914_v16 = vpop.f32.mrf.mxu1 }
 0x549   : > { %v3022_v7 = vadd.f32 %v3550_v52, %v3013_v27 }
 0x54a   : > { %v3009_v56 = vpop.f32.mrf.mxu1 }
 0x54b   : > { %v3014_v42 = vadd.f32 %v3009_v56, %v2935_v31  ;;  %v3024_v17 = vmax.f32 %v3022_v7, 0.0 }
 0x54c   : > { %v3915_v59 = vpop.f32.mrf.mxu1 }
 0x54d   : > { %v3023_v63 = vadd.f32 %v3550_v52, %v3014_v42 }
 0x54f   : > { %v3025_v39 = vmax.f32 %v3023_v63, 0.0 }
 0x551   : > { %v3026_v22 = vpack.c.bf16 %v3025_v39, %v3024_v17 }
 0x553   : > { %3916 = vmatprep.subr.bf16.mxu0 %v3026_v22  ;;  %3926 = vmatprep.subr.bf16.mxu1 %v3026_v22 }
 0x554   : > { %3917 = vmatpush3.bf16.msra.mxu0 %v3026_v22  ;;  %3927 = vmatpush3.bf16.msra.mxu1 %v3026_v22 }
 0x557   : > { %3919 = vmatmul.mubr.msk.bf16.vlgmr.msra.gmra.mxu0 %vm3103_vm5, %v4171_v19  ;;  %3923 = vmatmul.mubr.msk.bf16.vlgmr.msra.gmra.mxu1 %vm3103_vm5, %v4172_v32 }
 0x617   : > { %v3920_v44 = vpop.f32.mrf.mxu0  ;;  %v3924_v61 = vpop.f32.mrf.mxu1 }
 0x618   : > { %v3159_v1 = vadd.f32 %v3920_v44, %v3056_v21  ;;  %v3175_v14 = vadd.f32 %v3924_v61, %v3076_v43 }
 0x619   : > { %v3150_v2 = vpop.f32.mrf.mxu0  ;;  %v3166_v45 = vpop.f32.mrf.mxu1 }
 0x61a   : > { %3183 = vst [vmem:[%s355_s16 + $0x10] sm:$0xff] %v3159_v1  ;;  %v3151_v53 = vadd.f32 %v3150_v2, %v3046_v34  ;;  %v3167_v54 = vadd.f32 %v3166_v45, %v3066_v51  ;;  %3187 = vst [vmem:[%s355_s16 + $0x30] sm:$0xff] %v3175_v14 }
 0x61b   : > { %v3921_v3 = vpop.f32.mrf.mxu0  ;;  %v3925_v55 = vpop.f32.mrf.mxu1 }
 0x61c   : > { %3181 = vst [vmem:[%s355_s16] sm:$0xff] %v3151_v53  ;;  %3185 = vst [vmem:[%s355_s16 + $0x20] sm:$0xff] %v3167_v54  ;;  %v3162_v49 = vadd.f32 %v3921_v3, %v3061_v0  ;;  %v3178_v62 = vadd.f32 %v3925_v55, %v3081_v29 }
 0x61d   : > { %v3153_v41 = vpop.f32.mrf.mxu0  ;;  %v3169_v4 = vpop.f32.mrf.mxu1 }
 0x61e   : > { %3184 = vst [vmem:[%s355_s16 + $0x18] sm:$0xff] %v3162_v49  ;;  %3188 = vst [vmem:[%s355_s16 + $0x38] sm:$0xff] %v3178_v62  ;;  %v3154_v58 = vadd.f32 %v3153_v41, %v3051_v33  ;;  %v3170_v5 = vadd.f32 %v3169_v4, %v3071_v35 }
 0x620   : > { %3182 = vst [vmem:[%s355_s16 + $0x8] sm:$0xff] %v3154_v58  ;;  %3186 = vst [vmem:[%s355_s16 + $0x28] sm:$0xff] %v3170_v5 }
 0x621   : > { %4238 = shalt.err (!%p4235_p3)
}
 0x622   : > { %s4239_s28 = scalar_lea.hbm %s4907_s18, 1024  ;;  %s4243_s16 = scalar_lea.hbm %s4960_s9, 2048 }
 0x623   : > { %p4240_p2 = scmp.ne.s32.totalorder %s4907_s18, %s4239_s28  ;;  %p4244_p6 = scmp.lt.s32.totalorder %s4907_s18, %s4960_s9 }
 0x624   : > { %p4245_p9 = scmp.lt.s32.totalorder %s4243_s16, %s4239_s28 }
 0x625   : > { %p4241_p4 = pnand %p4240_p2, %p4396_p5 }
 0x626   : > { %p4246_p7 = por %p4245_p9, %p4244_p6 }
 0x627   : > { %p4242_p13 = pneg %p4241_p4 }
 0x629   : > { %p4247_p10 = pnand %p4246_p7, %p4242_p13 }
 0x62b   : > { %4250 = shalt.err (!%p4247_p10)
}
 0x62c   : > { %s4306_s27 = smov 128   ;;  %s4307_s21 = smov 8  }
 0x62d   : > { %3936 = dma.vmem_to_hbm [thread:$0]  (%p4396_p5), %s4902_s17, 1024, %s4907_s18, %s4911_s13, %s4306_s27, %s4306_s27, %s4307_s21  }
 0x62e PF: > { %p3953_p12 = scmp.ge.s32.totalorder %s4293_s12, 2  ;;  %s3218_s23 = sand.u32 1, %s4281_s30  }
 0x62f   : > { %p4971_p8 = scmp.ne.s32.totalorder %s4964_s20, 0  ;;  %s3219_s24 = scalar_lea.sflag [#allocation4], %s3218_s23 }
 0x631   : > { %p3946_p11 = pnand %p3953_p12, %p4971_p8 }
 0x633   : > { %p3947_p0 = pneg %p3946_p11 }
 0x635   : > { %4276 = dma.done.wait (%p3947_p0), %s3219_s24, 1024  }
 0x636   : > { %4278 = vsyncadd (%p3947_p0), %s3219_s24, 4294966272  ;;  %s4972_s26 = sld [smem:[#allocation11_spill]]  ;;  %p21_p1 = scmp.ge.s32.totalorder %s4383_s15, 4  }
 0x637   : > { %s4973_s30 = smov %s4285_s10  ;;  %s4974_s10 = smov %s4289_s11 }
 0x638   : > { %s4976_s12 = smov %s4383_s15  ;;  %23 = sbr.rel (!%p21_p1) target bundleno = 5 (0x5), region = 116 }
 0x63c   : > { %s4975_s11 = smov %s4972_s26 }
 0x63d   :  { %3224 = vsyncpa [#allocation3], 1 }
 0x63e   :  { %3226 = vsyncpa [#allocation3 + $0x1], 1 }
 0x63f   :  { %3227 = vsyncpa [#allocation6], 1 }
 0x640   :  { %3228 = vsyncpa [#allocation4], 1 }
 0x641   :  { %3230 = vsyncpa [#allocation4 + $0x1], 1 }

</bundles_post_ra>
